<compile_context>
chip_gen: v5e
topology: v5e:2x2
jax: 0.10.0
libtpu: 0.0.40
codegen_flags: <defaults>
</compile_context>

<pallas_src>
import jax
import jax.numpy as jnp
from jax import lax
from jax.experimental import pallas as pl
from jax.experimental.pallas import tpu as pltpu

BN_EPS = 1e-5


def _mlp_kernel(
    x_ref,                    # (T, D)  f32, contiguous batch-major input block
    w1_ref, b1_ref,           # (H1, D) bf16 ; (H1, 1) f32   (BN folded in)
    w2_ref, b2_ref,           # (H2, H1)      ; (H2, 1)
    w3_ref, b3_ref,           # (H3, H2)      ; (H3, 1)
    wo_ref, bo_ref,           # (H3, 1) f32   ; (1, 1) f32   (output layer, off-MXU)
    o_ref,                    # (1, T)  f32, lane-dense output
):
    """Fused MLP: 3x (Linear[+folded BN] -> ReLU) -> Linear; activations [feat, batch]."""
    x = x_ref[...].astype(w1_ref.dtype)        # (T, D) bf16

    # Layer 1: contract over D without any explicit transpose: (H1,D)x(T,D) -> (H1,T)
    h = lax.dot_general(
        w1_ref[...], x,
        dimension_numbers=(((1,), (1,)), ((), ())),
        preferred_element_type=jnp.float32,
    ) + b1_ref[...]
    h = jnp.maximum(h, 0.0)                    # (dropout = identity in eval mode)

    # Layer 2
    h = jnp.dot(w2_ref[...], h.astype(w2_ref.dtype),
                preferred_element_type=jnp.float32) + b2_ref[...]
    h = jnp.maximum(h, 0.0)

    # Layer 3
    h = jnp.dot(w3_ref[...], h.astype(w3_ref.dtype),
                preferred_element_type=jnp.float32) + b3_ref[...]
    h = jnp.maximum(h, 0.0)

    # Output layer: 1-row matmul replaced by VPU multiply + sublane reduce
    # (MXU would be ~1/2000th utilized and pay full push/drain latency).
    out = jnp.sum(h * wo_ref[...], axis=0, keepdims=True) + bo_ref[...]   # (1, T) f32
    o_ref[...] = out.astype(o_ref.dtype)


def _round_up(x, m):
    return ((x + m - 1) // m) * m


def _num_tensorcores():
    """TensorCores per chip: 2 on v7x, 1 on v5e/v6e. Degrades gracefully to 1."""
    try:
        dev = jax.devices()[0]
    except Exception:
        return 1
    n = getattr(dev, "num_cores", None)
    if isinstance(n, int) and n > 0:
        return n
    kind = str(getattr(dev, "device_kind", "")).lower()
    return 2 if "v7" in kind else 1


def _vmem_capacity_bytes():
    try:
        return int(pltpu.get_tpu_info().vmem_capacity_bytes)
    except Exception:
        return 64 * 1024 * 1024   # conservative (v7x physical VMEM)


def _pick_batch_tile(B, D, *, num_cores=None, vmem_bytes=None):
    """Generation-aware lane-aligned tile pick.

    Single-TC chips (v5e/v6e): largest tile -> grid of 1-2 steps (per-step
    pipeline overhead ~0.35us dominates a kernel this small).
    Multi-TC chips (v7x): require >= 2 steps per TensorCore so the "parallel"
    grid axis both shards across cores and software-pipelines the x DMA.
    A VMEM clamp keeps the double-buffered x block under ~40% of physical VMEM.
    """
    if num_cores is None:
        num_cores = _num_tensorcores()
    if vmem_bytes is None:
        vmem_bytes = _vmem_capacity_bytes()
    min_tiles = 2 * num_cores if num_cores > 1 else 1
    budget = int(vmem_bytes * 0.4)

    candidates = [t for t in (8192, 4096, 2048, 1024, 512, 256, 128) if t <= B]
    for need in (min_tiles, 1):                      # relax if batch is too small
        for t in candidates:
            if B % t != 0 or B // t < need:
                continue
            # x block is padded to 128 lanes in VMEM; double-buffered in+out blocks.
            x_vmem = t * max(_round_up(D, 128), 128) * 4
            working = 2 * (x_vmem + t * 4)
            if working <= budget:
                return t
    return B   # tiny / non-128-aligned batch: single full-array tile (masked stores)


def enhanced_nn_forward(x, params, *, batch_tile=None):
    """Run the fused Pallas MLP.  x: [B, input_size] float32 -> [B, 1] float32."""
    B, D = x.shape
    if batch_tile is None:
        batch_tile = _pick_batch_tile(B, D)
    assert B % batch_tile == 0, "batch must be divisible by batch_tile"
    n_tiles = B // batch_tile

    (w1, b1, w2, b2, w3, b3, wo, bo) = params
    out_dim = bo.shape[0]   # = 1

    # x is blocked directly -- contiguous (batch_tile, D) slab, no HBM transpose.
    x_spec = pl.BlockSpec((batch_tile, D), lambda i: (i, 0))
    # Output keeps batch on the lane axis -> lane-dense stores.
    out_spec = pl.BlockSpec((out_dim, batch_tile), lambda i: (0, i))

    def rep_spec(p):
        # Replicated full-array block: constant index_map -> DMA'd once, reused.
        return pl.BlockSpec(p.shape, lambda i: (0, 0))

    in_specs = [x_spec] + [rep_spec(p) for p in params]

    fn = pl.pallas_call(
        _mlp_kernel,
        out_shape=jax.ShapeDtypeStruct((out_dim, B), jnp.float32),
        grid_spec=pltpu.PrefetchScalarGridSpec(
            num_scalar_prefetch=0,
            grid=(n_tiles,),
            in_specs=in_specs,
            out_specs=out_spec,
        ),
        compiler_params=pltpu.CompilerParams(
            dimension_semantics=("parallel",),
        ),
    )
    out_t = fn(x, *params)            # (1, B), batch lane-dense
    return out_t.T                    # (B, 1) -- free reshape of a (1,B) slab


def init_params(key, input_size, hidden_layers=(128, 64, 32), *, weight_dtype=jnp.bfloat16):
    """Parameters matching EnhancedNeuralNetwork._initialize_weights, BN folded in.

    Hidden Linear weights: kaiming_normal_(fan_in, relu gain), bias 0; BatchNorm1d
    with fresh params / running stats (gamma=1, beta=0, mean=0, var=1) folded into
    the preceding Linear:
        scale = gamma / sqrt(var + eps), shift = beta - mean*scale
        W' = scale[:, None] * W,         b' = scale*b + shift
    Hidden weights stored [out, in] in `weight_dtype` (bf16 for the MXU); biases
    f32 as [out, 1] columns for the [feat, batch] kernel layout.  The output
    layer is stored as an f32 (H_last, 1) column + (1,1) bias so the kernel can
    evaluate it on the VPU/XLU instead of the MXU.
    """
    params = []
    cur = input_size
    for h in hidden_layers:
        key, wk = jax.random.split(key)
        std = (2.0 / cur) ** 0.5                      # kaiming fan_in, relu gain
        w = std * jax.random.normal(wk, (h, cur), dtype=jnp.float32)
        b = jnp.zeros((h,), dtype=jnp.float32)
        gamma = jnp.ones((h,), jnp.float32)
        beta = jnp.zeros((h,), jnp.float32)
        running_mean = jnp.zeros((h,), jnp.float32)
        running_var = jnp.ones((h,), jnp.float32)
        scale = gamma * jax.lax.rsqrt(running_var + BN_EPS)
        shift = beta - running_mean * scale
        w_f = (scale[:, None] * w).astype(weight_dtype)
        b_f = (scale * b + shift).astype(jnp.float32)[:, None]   # (h, 1)
        params += [w_f, b_f]
        cur = h

    key, wk = jax.random.split(key)
    std = (1.0 / cur) ** 0.5                          # kaiming fan_in, linear gain
    wo = (std * jax.random.normal(wk, (1, cur), dtype=jnp.float32)).T   # (cur, 1) f32
    bo = jnp.zeros((1, 1), dtype=jnp.float32)
    params += [wo, bo]
    return tuple(params)


def reference_forward(x, params):
    """Pure-JAX reference of the same eval-mode forward (same folded params / dtypes)."""
    (w1, b1, w2, b2, w3, b3, wo, bo) = params
    h = x
    for w, b in ((w1, b1), (w2, b2), (w3, b3)):
        h = jnp.dot(h.astype(w.dtype), w.T, preferred_element_type=jnp.float32) + b[:, 0]
        h = jnp.maximum(h, 0.0)
    return jnp.dot(h, wo) + bo[0]     # f32 x (H3,1) f32 -> (B, 1)


if __name__ == "__main__":
    key = jax.random.PRNGKey(0)
    key, xk, pk = jax.random.split(key, 3)

    batch = 1024          # single-TC chips: tile=1024/grid=(1,); v7x: tile=256/grid=(4,)
    input_size = 32
    x = jax.random.normal(xk, (batch, input_size), dtype=jnp.float32)

    params = init_params(pk, input_size, hidden_layers=(128, 64, 32))

    out = enhanced_nn_forward(x, params)
    out = jax.block_until_ready(out)

    ref = reference_forward(x, params)
    assert out.shape == (batch, 1), out.shape
    assert jnp.allclose(out, ref, atol=1e-3, rtol=1e-3), (
        "mismatch vs reference, max abs err = "
        + str(float(jnp.max(jnp.abs(out - ref)))))

    print("KERNEL_OK")
</pallas_src>

<mosaic_0001>
module attributes {stable_mosaic.version = 11 : i64} {
  func.func @_mlp_kernel(%arg0: i32, %arg1: memref<1024x32xf32, #tpu.memory_space<vmem>>, %arg2: memref<128x32xbf16, #tpu.memory_space<vmem>>, %arg3: memref<128x1xf32, #tpu.memory_space<vmem>>, %arg4: memref<64x128xbf16, #tpu.memory_space<vmem>>, %arg5: memref<64x1xf32, #tpu.memory_space<vmem>>, %arg6: memref<32x64xbf16, #tpu.memory_space<vmem>>, %arg7: memref<32x1xf32, #tpu.memory_space<vmem>>, %arg8: memref<32x1xf32, #tpu.memory_space<vmem>>, %arg9: memref<1x1xf32, #tpu.memory_space<vmem>>, %arg10: memref<1x1024xf32, #tpu.memory_space<vmem>>) attributes {dimension_semantics = [#tpu.dimension_semantics<parallel>], iteration_bounds = array<i64: 1>, scalar_prefetch = 0 : i64, scratch_operands = 0 : i64, tpu.core_type = #tpu.core_type<tc>, window_params = [{transform_indices = @transform_0, window_bounds = array<i64: 1024, 32>}, {pipeline_mode = #tpu.pipeline_mode<synchronous>, transform_indices = @transform_1, window_bounds = array<i64: 128, 32>}, {pipeline_mode = #tpu.pipeline_mode<synchronous>, transform_indices = @transform_2, window_bounds = array<i64: 128, 1>}, {pipeline_mode = #tpu.pipeline_mode<synchronous>, transform_indices = @transform_3, window_bounds = array<i64: 64, 128>}, {pipeline_mode = #tpu.pipeline_mode<synchronous>, transform_indices = @transform_4, window_bounds = array<i64: 64, 1>}, {pipeline_mode = #tpu.pipeline_mode<synchronous>, transform_indices = @transform_5, window_bounds = array<i64: 32, 64>}, {pipeline_mode = #tpu.pipeline_mode<synchronous>, transform_indices = @transform_6, window_bounds = array<i64: 32, 1>}, {pipeline_mode = #tpu.pipeline_mode<synchronous>, transform_indices = @transform_7, window_bounds = array<i64: 32, 1>}, {pipeline_mode = #tpu.pipeline_mode<synchronous>, transform_indices = @transform_8, window_bounds = array<i64: 1, 1>}, {transform_indices = @transform_9, window_bounds = array<i64: 1, 1024>}]} {
    %c0 = arith.constant 0 : index
    %c0_0 = arith.constant 0 : index
    %0 = vector.load %arg1[%c0, %c0_0] : memref<1024x32xf32, #tpu.memory_space<vmem>>, vector<1024x32xf32>
    %1 = arith.truncf %0 : vector<1024x32xf32> to vector<1024x32xbf16>
    %c0_1 = arith.constant 0 : index
    %c0_2 = arith.constant 0 : index
    %2 = vector.load %arg2[%c0_1, %c0_2] : memref<128x32xbf16, #tpu.memory_space<vmem>>, vector<128x32xbf16>
    %cst = arith.constant dense<0.000000e+00> : vector<128x1024xf32>
    %3 = tpu.matmul %2, %1, %cst {dimension_numbers = #tpu.dot_dimension_numbers<[1], [1], [0], [0], [0, 0, 1, 0], [], []>} : vector<128x32xbf16>, vector<1024x32xbf16>, vector<128x1024xf32> -> vector<128x1024xf32>
    %c0_3 = arith.constant 0 : index
    %c0_4 = arith.constant 0 : index
    %4 = vector.load %arg3[%c0_3, %c0_4] : memref<128x1xf32, #tpu.memory_space<vmem>>, vector<128x1xf32>
    %5 = vector.broadcast %4 : vector<128x1xf32> to vector<128x1024xf32>
    %6 = arith.addf %3, %5 : vector<128x1024xf32>
    %cst_5 = arith.constant 0.000000e+00 : f32
    %7 = vector.broadcast %cst_5 : f32 to vector<128x1024xf32>
    %8 = arith.maximumf %6, %7 : vector<128x1024xf32>
    %c0_6 = arith.constant 0 : index
    %c0_7 = arith.constant 0 : index
    %9 = vector.load %arg4[%c0_6, %c0_7] : memref<64x128xbf16, #tpu.memory_space<vmem>>, vector<64x128xbf16>
    %10 = arith.truncf %8 : vector<128x1024xf32> to vector<128x1024xbf16>
    %cst_8 = arith.constant dense<0.000000e+00> : vector<64x1024xf32>
    %11 = tpu.matmul %9, %10, %cst_8 {dimension_numbers = #tpu.dot_dimension_numbers<[1], [0], [0], [1], [0, 0, 1, 1], [], []>} : vector<64x128xbf16>, vector<128x1024xbf16>, vector<64x1024xf32> -> vector<64x1024xf32>
    %c0_9 = arith.constant 0 : index
    %c0_10 = arith.constant 0 : index
    %12 = vector.load %arg5[%c0_9, %c0_10] : memref<64x1xf32, #tpu.memory_space<vmem>>, vector<64x1xf32>
    %13 = vector.broadcast %12 : vector<64x1xf32> to vector<64x1024xf32>
    %14 = arith.addf %11, %13 : vector<64x1024xf32>
    %cst_11 = arith.constant 0.000000e+00 : f32
    %15 = vector.broadcast %cst_11 : f32 to vector<64x1024xf32>
    %16 = arith.maximumf %14, %15 : vector<64x1024xf32>
    %c0_12 = arith.constant 0 : index
    %c0_13 = arith.constant 0 : index
    %17 = vector.load %arg6[%c0_12, %c0_13] : memref<32x64xbf16, #tpu.memory_space<vmem>>, vector<32x64xbf16>
    %18 = arith.truncf %16 : vector<64x1024xf32> to vector<64x1024xbf16>
    %cst_14 = arith.constant dense<0.000000e+00> : vector<32x1024xf32>
    %19 = tpu.matmul %17, %18, %cst_14 {dimension_numbers = #tpu.dot_dimension_numbers<[1], [0], [0], [1], [0, 0, 1, 1], [], []>} : vector<32x64xbf16>, vector<64x1024xbf16>, vector<32x1024xf32> -> vector<32x1024xf32>
    %c0_15 = arith.constant 0 : index
    %c0_16 = arith.constant 0 : index
    %20 = vector.load %arg7[%c0_15, %c0_16] : memref<32x1xf32, #tpu.memory_space<vmem>>, vector<32x1xf32>
    %21 = vector.broadcast %20 : vector<32x1xf32> to vector<32x1024xf32>
    %22 = arith.addf %19, %21 : vector<32x1024xf32>
    %cst_17 = arith.constant 0.000000e+00 : f32
    %23 = vector.broadcast %cst_17 : f32 to vector<32x1024xf32>
    %24 = arith.maximumf %22, %23 : vector<32x1024xf32>
    %c0_18 = arith.constant 0 : index
    %c0_19 = arith.constant 0 : index
    %25 = vector.load %arg8[%c0_18, %c0_19] : memref<32x1xf32, #tpu.memory_space<vmem>>, vector<32x1xf32>
    %26 = vector.broadcast %25 : vector<32x1xf32> to vector<32x1024xf32>
    %27 = arith.mulf %24, %26 : vector<32x1024xf32>
    %cst_20 = arith.constant dense<0.000000e+00> : vector<1024xf32>
    %28 = vector.multi_reduction <add>, %27, %cst_20 [0] : vector<32x1024xf32> to vector<1024xf32>
    %29 = vector.shape_cast %28 : vector<1024xf32> to vector<1x1024xf32>
    %c0_21 = arith.constant 0 : index
    %c0_22 = arith.constant 0 : index
    %30 = vector.load %arg9[%c0_21, %c0_22] : memref<1x1xf32, #tpu.memory_space<vmem>>, vector<1x1xf32>
    %31 = vector.broadcast %30 : vector<1x1xf32> to vector<1x1024xf32>
    %32 = arith.addf %29, %31 : vector<1x1024xf32>
    %c0_23 = arith.constant 0 : index
    %c0_24 = arith.constant 0 : index
    %33 = vector.load %arg10[%c0_23, %c0_24] : memref<1x1024xf32, #tpu.memory_space<vmem>>, vector<1x1024xf32>
    tpu.vector_store %arg10[%c0_23, %c0_24], %32 {strides = array<i32>} : memref<1x1024xf32, #tpu.memory_space<vmem>>, vector<1x1024xf32>,
    return
  }
  func.func @transform_0(%arg0: i32) -> (i32, i32) {
    %c0_i32 = arith.constant 0 : i32
    %c0_i32_0 = arith.constant 0 : i32
    return %arg0, %c0_i32 : i32, i32
  }
  func.func @transform_1(%arg0: i32) -> (i32, i32) {
    %c0_i32 = arith.constant 0 : i32
    %c0_i32_0 = arith.constant 0 : i32
    %c0_i32_1 = arith.constant 0 : i32
    return %c0_i32, %c0_i32_0 : i32, i32
  }
  func.func @transform_2(%arg0: i32) -> (i32, i32) {
    %c0_i32 = arith.constant 0 : i32
    %c0_i32_0 = arith.constant 0 : i32
    %c0_i32_1 = arith.constant 0 : i32
    return %c0_i32, %c0_i32_0 : i32, i32
  }
  func.func @transform_3(%arg0: i32) -> (i32, i32) {
    %c0_i32 = arith.constant 0 : i32
    %c0_i32_0 = arith.constant 0 : i32
    %c0_i32_1 = arith.constant 0 : i32
    return %c0_i32, %c0_i32_0 : i32, i32
  }
  func.func @transform_4(%arg0: i32) -> (i32, i32) {
    %c0_i32 = arith.constant 0 : i32
    %c0_i32_0 = arith.constant 0 : i32
    %c0_i32_1 = arith.constant 0 : i32
    return %c0_i32, %c0_i32_0 : i32, i32
  }
  func.func @transform_5(%arg0: i32) -> (i32, i32) {
    %c0_i32 = arith.constant 0 : i32
    %c0_i32_0 = arith.constant 0 : i32
    %c0_i32_1 = arith.constant 0 : i32
    return %c0_i32, %c0_i32_0 : i32, i32
  }
  func.func @transform_6(%arg0: i32) -> (i32, i32) {
    %c0_i32 = arith.constant 0 : i32
    %c0_i32_0 = arith.constant 0 : i32
    %c0_i32_1 = arith.constant 0 : i32
    return %c0_i32, %c0_i32_0 : i32, i32
  }
  func.func @transform_7(%arg0: i32) -> (i32, i32) {
    %c0_i32 = arith.constant 0 : i32
    %c0_i32_0 = arith.constant 0 : i32
    %c0_i32_1 = arith.constant 0 : i32
    return %c0_i32, %c0_i32_0 : i32, i32
  }
  func.func @transform_8(%arg0: i32) -> (i32, i32) {
    %c0_i32 = arith.constant 0 : i32
    %c0_i32_0 = arith.constant 0 : i32
    %c0_i32_1 = arith.constant 0 : i32
    return %c0_i32, %c0_i32_0 : i32, i32
  }
  func.func @transform_9(%arg0: i32) -> (i32, i32) {
    %c0_i32 = arith.constant 0 : i32
    %c0_i32_0 = arith.constant 0 : i32
    return %c0_i32, %arg0 : i32, i32
  }
}

</mosaic_0001>

<bundles_post_ra>
// kernel: tpu_custom_call.1
= control target key start
LH: loop header
LB: loop body
LE: loop exit
PB: predicated region body
PF: predicated region fallthrough
CT: control target
= control target key end

     0   :  { %s3744_s0 = inlined_call_operand.vmem [shape: f32[1024,32], index: 0, kind: input, shape index: {}]   ;;  %s3745_s1 = inlined_call_operand.vmem [shape: bf16[128,32], index: 1, kind: input, shape index: {}]   ;;  %s3746_s2 = inlined_call_operand.vmem [shape: f32[128,1], index: 2, kind: input, shape index: {}]   ;;  %s3747_s3 = inlined_call_operand.vmem [shape: bf16[64,128], index: 3, kind: input, shape index: {}]   ;;  %s3748_s4 = inlined_call_operand.vmem [shape: f32[64,1], index: 4, kind: input, shape index: {}]   ;;  %s3749_s5 = inlined_call_operand.vmem [shape: bf16[32,64], index: 5, kind: input, shape index: {}]   ;;  %s3750_s6 = inlined_call_operand.vmem [shape: f32[32,1], index: 6, kind: input, shape index: {}]   ;;  %s3751_s7 = inlined_call_operand.vmem [shape: f32[32,1], index: 7, kind: input, shape index: {}]   ;;  %s3752_s8 = inlined_call_operand.<no memory space> [shape: f32[1,1], index: 8, kind: input, shape index: {}]   ;;  %s3753_s9 = inlined_call_operand.hbm [shape: f32[1,1024], index: 9, kind: output, shape index: {}]  }
   0x1   :  { %v14_v0 = vstv %s3752_s8 }
   0x2   :  { %15 = vst [vmem:[#allocation2] sm:$0x1] %v14_v0 }
   0x3   :  { %v50_v1 = vld [vmem:[%s3744_s0 + $0x70] sm:$0xff]  ;;  %v51_v2 = vld [vmem:[%s3744_s0 + $0x78] sm:$0xff]  ;;  %vm380_vm0 = vcmask 261120   ;;  %v48_v12 = vld [vmem:[%s3744_s0 + $0x60] sm:$0xff]  ;;  %v2189_v45 = vmov 0  }
   0x4   :  { %v66_v3 = vld [vmem:[%s3744_s0 + $0xf0] sm:$0xff]  ;;  %v171_v4 = vpack.c.bf16 %v51_v2, %v50_v1  ;;  %v67_v5 = vld [vmem:[%s3744_s0 + $0xf8] sm:$0xff]  ;;  %v49_v15 = vld [vmem:[%s3744_s0 + $0x68] sm:$0xff]  ;;  %2160 = vset.pattern.permute.xlu0 %v2189_v45  ;;  %2162 = vset.pattern.permute.xlu2 %v2189_v45 }
   0x5   :  { %v82_v6 = vld [vmem:[%s3744_s0 + $0x170] sm:$0xff]  ;;  %v83_v7 = vld [vmem:[%s3744_s0 + $0x178] sm:$0xff]  ;;  %v179_v8 = vpack.c.bf16 %v67_v5, %v66_v3  ;;  %v64_v16 = vld [vmem:[%s3744_s0 + $0xe0] sm:$0xff]  ;;  %v170_v24 = vpack.c.bf16 %v49_v15, %v48_v12  ;;  %2161 = vset.pattern.permute.xlu1 %v2189_v45 }
   0x6   :  { %v187_v9 = vpack.c.bf16 %v83_v7, %v82_v6  ;;  %v98_v10 = vld [vmem:[%s3744_s0 + $0x1f0] sm:$0xff]  ;;  %v99_v11 = vld [vmem:[%s3744_s0 + $0x1f8] sm:$0xff]  ;;  %v427_v13 = vsel %vm380_vm0, %v171_v4, 0  ;;  %v65_v17 = vld [vmem:[%s3744_s0 + $0xe8] sm:$0xff] }
   0x7   :  { %v195_v14 = vpack.c.bf16 %v99_v11, %v98_v10  ;;  %597 = vmatpush.bf16.xpose.msra.mxu0 %v427_v13  ;;  %v451_v18 = vsel %vm380_vm0, %v179_v8, 0  ;;  %v80_v20 = vld [vmem:[%s3744_s0 + $0x160] sm:$0xff]  ;;  %v81_v21 = vld [vmem:[%s3744_s0 + $0x168] sm:$0xff]  ;;  %v178_v26 = vpack.c.bf16 %v65_v17, %v64_v16  ;;  %v424_v29 = vsel %vm380_vm0, %v170_v24, 0  ;;  %v46_v32 = vld [vmem:[%s3744_s0 + $0x50] sm:$0xff] }
   0x8   :  { %v475_v19 = vsel %vm380_vm0, %v187_v9, 0  ;;  %v96_v22 = vld [vmem:[%s3744_s0 + $0x1e0] sm:$0xff]  ;;  %646 = vmatpush.bf16.xpose.msra.mxu1 %v451_v18  ;;  %v97_v25 = vld [vmem:[%s3744_s0 + $0x1e8] sm:$0xff]  ;;  %v186_v27 = vpack.c.bf16 %v81_v21, %v80_v20  ;;  %v47_v33 = vld [vmem:[%s3744_s0 + $0x58] sm:$0xff] }
   0x9   :  { %695 = vmatpush.bf16.xpose.msra.mxu2 %v475_v19  ;;  %v499_v23 = vsel %vm380_vm0, %v195_v14, 0  ;;  %v194_v28 = vpack.c.bf16 %v97_v25, %v96_v22  ;;  %v448_v30 = vsel %vm380_vm0, %v178_v26, 0  ;;  %v62_v34 = vld [vmem:[%s3744_s0 + $0xd0] sm:$0xff]  ;;  %v63_v36 = vld [vmem:[%s3744_s0 + $0xd8] sm:$0xff]  ;;  %v169_v41 = vpack.c.bf16 %v47_v33, %v46_v32 }
   0xa   :  { %744 = vmatpush.bf16.xpose.msra.mxu3 %v499_v23  ;;  %v472_v31 = vsel %vm380_vm0, %v186_v27, 0  ;;  %v78_v37 = vld [vmem:[%s3744_s0 + $0x150] sm:$0xff]  ;;  %v79_v38 = vld [vmem:[%s3744_s0 + $0x158] sm:$0xff]  ;;  %v177_v42 = vpack.c.bf16 %v63_v36, %v62_v34 }
   0xb   :  { %v496_v35 = vsel %vm380_vm0, %v194_v28, 0  ;;  %v94_v39 = vld [vmem:[%s3744_s0 + $0x1d0] sm:$0xff]  ;;  %v95_v40 = vld [vmem:[%s3744_s0 + $0x1d8] sm:$0xff]  ;;  %v185_v43 = vpack.c.bf16 %v79_v38, %v78_v37  ;;  %v421_v47 = vsel %vm380_vm0, %v169_v41, 0 }
   0xc   :  { %v193_v44 = vpack.c.bf16 %v95_v40, %v94_v39  ;;  %v258_v46 = vld [vmem:[%s3746_s2 + $0x70] sm:$0xff] }
   0xd   :  { %332 = vperm.xlu0 %2160, %v258_v46  }
   0xf   :  { %598 = vmatpush.bf16.xpose.msra.mxu0 %v424_v29 }
  0x10   :  { %647 = vmatpush.bf16.xpose.msra.mxu1 %v448_v30 }
  0x11   :  { %696 = vmatpush.bf16.xpose.msra.mxu2 %v472_v31 }
  0x12   :  { %745 = vmatpush.bf16.xpose.msra.mxu3 %v496_v35 }
  0x13   :  { %16 = vsyncpa [#allocation4], 0  ;;  %v445_v48 = vsel %vm380_vm0, %v177_v42, 0  ;;  %v469_v49 = vsel %vm380_vm0, %v185_v43, 0  ;;  %v44_v50 = vld [vmem:[%s3744_s0 + $0x40] sm:$0xff]  ;;  %v45_v51 = vld [vmem:[%s3744_s0 + $0x48] sm:$0xff] }
  0x14   :  { %v60_v52 = vld [vmem:[%s3744_s0 + $0xc0] sm:$0xff]  ;;  %v493_v53 = vsel %vm380_vm0, %v193_v44, 0  ;;  %v61_v54 = vld [vmem:[%s3744_s0 + $0xc8] sm:$0xff]  ;;  %v168_v59 = vpack.c.bf16 %v45_v51, %v44_v50  ;;  %v259_v62 = vld [vmem:[%s3746_s2 + $0x78] sm:$0xff]  ;;  %vm1627_vm1 = vcmask 523264   ;;  %vm1976_vm2 = vcmask 1040384  }
  0x15   :  { %v76_v55 = vld [vmem:[%s3744_s0 + $0x140] sm:$0xff]  ;;  %v77_v56 = vld [vmem:[%s3744_s0 + $0x148] sm:$0xff]  ;;  %v176_v60 = vpack.c.bf16 %v61_v54, %v60_v52  ;;  %337 = vperm.xlu0 %2160, %v259_v62   ;;  %v42_v3 = vld [vmem:[%s3744_s0 + $0x30] sm:$0xff]  ;;  %vm1978_vm3 = vcmask 1042434   ;;  %vm1980_vm4 = vcmask 1041408   ;;  %vm1982_vm5 = vcmask 1044484  }
  0x16   :  { %v92_v57 = vld [vmem:[%s3744_s0 + $0x1c0] sm:$0xff]  ;;  %v93_v58 = vld [vmem:[%s3744_s0 + $0x1c8] sm:$0xff]  ;;  %v184_v61 = vpack.c.bf16 %v77_v56, %v76_v55  ;;  %v418_v0 = vsel %vm380_vm0, %v168_v59, 0  ;;  %v43_v4 = vld [vmem:[%s3744_s0 + $0x38] sm:$0xff]  ;;  %vm1984_vm6 = vcmask 1046534   ;;  %vm1986_vm7 = vcmask 1045508  }
  0x17   :  { %599 = vmatpush.bf16.xpose.msra.mxu0 %v421_v47  ;;  %v192_v63 = vpack.c.bf16 %v93_v58, %v92_v57  ;;  %v442_v1 = vsel %vm380_vm0, %v176_v60, 0  ;;  %v58_v5 = vld [vmem:[%s3744_s0 + $0xb0] sm:$0xff]  ;;  %v59_v7 = vld [vmem:[%s3744_s0 + $0xb8] sm:$0xff]  ;;  %v167_v12 = vpack.c.bf16 %v43_v4, %v42_v3  ;;  %v40_v19 = vld [vmem:[%s3744_s0 + $0x20] sm:$0xff]  ;;  %s1999_s17 = sshll.u32 %s3753_s9, 4  ;;  %vm1988_vm8 = vcmask 1043456   ;;  %s2000_s17 = int_to_ptr.hbm [resolvable:$true] %s1999_s17 }
  0x18   :  { %648 = vmatpush.bf16.xpose.msra.mxu1 %v445_v48  ;;  %v466_v2 = vsel %vm380_vm0, %v184_v61, 0  ;;  %v74_v8 = vld [vmem:[%s3744_s0 + $0x130] sm:$0xff]  ;;  %v75_v9 = vld [vmem:[%s3744_s0 + $0x138] sm:$0xff]  ;;  %v175_v13 = vpack.c.bf16 %v59_v7, %v58_v5  ;;  %v41_v20 = vld [vmem:[%s3744_s0 + $0x28] sm:$0xff] }
  0x19   :  { %697 = vmatpush.bf16.xpose.msra.mxu2 %v469_v49  ;;  %v490_v6 = vsel %vm380_vm0, %v192_v63, 0  ;;  %v90_v10 = vld [vmem:[%s3744_s0 + $0x1b0] sm:$0xff]  ;;  %v91_v11 = vld [vmem:[%s3744_s0 + $0x1b8] sm:$0xff]  ;;  %v183_v14 = vpack.c.bf16 %v75_v9, %v74_v8  ;;  %v415_v16 = vsel %vm380_vm0, %v167_v12, 0  ;;  %v56_v21 = vld [vmem:[%s3744_s0 + $0xa0] sm:$0xff]  ;;  %v166_v28 = vpack.c.bf16 %v41_v20, %v40_v19 }
  0x1a   :  { %746 = vmatpush.bf16.xpose.msra.mxu3 %v493_v53  ;;  %v191_v15 = vpack.c.bf16 %v91_v11, %v90_v10  ;;  %v439_v17 = vsel %vm380_vm0, %v175_v13, 0  ;;  %v57_v23 = vld [vmem:[%s3744_s0 + $0xa8] sm:$0xff]  ;;  %v72_v24 = vld [vmem:[%s3744_s0 + $0x120] sm:$0xff]  ;;  %v254_v31 = vld [vmem:[%s3746_s2 + $0x50] sm:$0xff] }
  0x1b   :  { %v463_v18 = vsel %vm380_vm0, %v183_v14, 0  ;;  %v73_v25 = vld [vmem:[%s3744_s0 + $0x128] sm:$0xff]  ;;  %v88_v26 = vld [vmem:[%s3744_s0 + $0x1a0] sm:$0xff]  ;;  %v174_v32 = vpack.c.bf16 %v57_v23, %v56_v21  ;;  %312 = vperm.xlu2 %2162, %v254_v31   ;;  %v412_v35 = vsel %vm380_vm0, %v166_v28, 0  ;;  %v38_v36 = vld [vmem:[%s3744_s0 + $0x10] sm:$0xff] }
  0x1c   :  { %v487_v22 = vsel %vm380_vm0, %v191_v15, 0  ;;  %v89_v27 = vld [vmem:[%s3744_s0 + $0x1a8] sm:$0xff]  ;;  %v252_v29 = vld [vmem:[%s3746_s2 + $0x40] sm:$0xff]  ;;  %v182_v33 = vpack.c.bf16 %v73_v25, %v72_v24  ;;  %v39_v39 = vld [vmem:[%s3744_s0 + $0x18] sm:$0xff] }
  0x1d   :  { %v256_v30 = vld [vmem:[%s3746_s2 + $0x60] sm:$0xff]  ;;  %302 = vperm.xlu0 %2160, %v252_v29   ;;  %v190_v34 = vpack.c.bf16 %v89_v27, %v88_v26  ;;  %v436_v37 = vsel %vm380_vm0, %v174_v32, 0  ;;  %v54_v40 = vld [vmem:[%s3744_s0 + $0x90] sm:$0xff]  ;;  %v55_v41 = vld [vmem:[%s3744_s0 + $0x98] sm:$0xff]  ;;  %v165_v48 = vpack.c.bf16 %v39_v39, %v38_v36 }
  0x1e   :  { %322 = vperm.xlu1 %2161, %v256_v30   ;;  %v460_v38 = vsel %vm380_vm0, %v182_v33, 0  ;;  %v70_v43 = vld [vmem:[%s3744_s0 + $0x110] sm:$0xff]  ;;  %v71_v44 = vld [vmem:[%s3744_s0 + $0x118] sm:$0xff]  ;;  %v173_v49 = vpack.c.bf16 %v55_v41, %v54_v40  ;;  %v36_v55 = vld [vmem:[%s3744_s0] sm:$0xff] }
  0x1f   :  { %600 = vmatpush.bf16.xpose.msra.mxu0 %v418_v0  ;;  %v484_v42 = vsel %vm380_vm0, %v190_v34, 0  ;;  %v251_v45 = vld [vmem:[%s3746_s2 + $0x38] sm:$0xff]  ;;  %v86_v46 = vld [vmem:[%s3744_s0 + $0x190] sm:$0xff]  ;;  %v181_v50 = vpack.c.bf16 %v71_v44, %v70_v43  ;;  %v409_v52 = vsel %vm380_vm0, %v165_v48, 0  ;;  %v37_v56 = vld [vmem:[%s3744_s0 + $0x8] sm:$0xff] }
  0x20   :  { %649 = vmatpush.bf16.xpose.msra.mxu1 %v442_v1  ;;  %v87_v47 = vld [vmem:[%s3744_s0 + $0x198] sm:$0xff]  ;;  %v433_v53 = vsel %vm380_vm0, %v173_v49, 0  ;;  %v52_v57 = vld [vmem:[%s3744_s0 + $0x80] sm:$0xff]  ;;  %v53_v59 = vld [vmem:[%s3744_s0 + $0x88] sm:$0xff]  ;;  %v164_v0 = vpack.c.bf16 %v37_v56, %v36_v55 }
  0x21   :  { %698 = vmatpush.bf16.xpose.msra.mxu2 %v466_v2  ;;  %v189_v51 = vpack.c.bf16 %v87_v47, %v86_v46  ;;  %v457_v54 = vsel %vm380_vm0, %v181_v50, 0  ;;  %v68_v60 = vld [vmem:[%s3744_s0 + $0x100] sm:$0xff]  ;;  %v69_v61 = vld [vmem:[%s3744_s0 + $0x108] sm:$0xff]  ;;  %v255_v2 = vld [vmem:[%s3746_s2 + $0x58] sm:$0xff]  ;;  %v172_v4 = vpack.c.bf16 %v53_v59, %v52_v57 }
  0x22   :  { %747 = vmatpush.bf16.xpose.msra.mxu3 %v490_v6  ;;  %v84_v62 = vld [vmem:[%s3744_s0 + $0x180] sm:$0xff]  ;;  %v85_v63 = vld [vmem:[%s3744_s0 + $0x188] sm:$0xff]  ;;  %v246_v3 = vld [vmem:[%s3746_s2 + $0x10] sm:$0xff]  ;;  %v180_v5 = vpack.c.bf16 %v69_v61, %v68_v60  ;;  %v406_v7 = vsel %vm380_vm0, %v164_v0, 0 }
  0x23   :  { %v481_v58 = vsel %vm380_vm0, %v189_v51, 0  ;;  %v257_v1 = vld [vmem:[%s3746_s2 + $0x68] sm:$0xff]  ;;  %v188_v6 = vpack.c.bf16 %v85_v63, %v84_v62  ;;  %317 = vperm.xlu2 %2162, %v255_v2   ;;  %v430_v8 = vsel %vm380_vm0, %v172_v4, 0  ;;  %v250_v12 = vld [vmem:[%s3746_s2 + $0x30] sm:$0xff]  ;;  %v2507_v14 = vld [vmem:[%s3745_s1] sm:$0xff] }
  0x24   :  { %v454_v9 = vsel %vm380_vm0, %v180_v5, 0  ;;  %v253_v11 = vld [vmem:[%s3746_s2 + $0x48] sm:$0xff]  ;;  %v162_v19 = vld [vmem:[%s3744_s0 + $0x3f0] sm:$0xff]  ;;  %v163_v20 = vld [vmem:[%s3744_s0 + $0x3f8] sm:$0xff] }
  0x25   :  { %297 = vperm.xlu0 %2160, %v251_v45   ;;  %v478_v10 = vsel %vm380_vm0, %v188_v6, 0  ;;  %v245_v13 = vld [vmem:[%s3746_s2 + $0x8] sm:$0xff]  ;;  %v247_v25 = vld [vmem:[%s3746_s2 + $0x18] sm:$0xff]  ;;  %v244_v26 = vld [vmem:[%s3746_s2] sm:$0xff] }
  0x26   :  { %327 = vperm.xlu1 %2161, %v257_v1   ;;  %v249_v15 = vld [vmem:[%s3746_s2 + $0x28] sm:$0xff]  ;;  %v144_v28 = vld [vmem:[%s3744_s0 + $0x360] sm:$0xff]  ;;  %v114_v33 = vld [vmem:[%s3744_s0 + $0x270] sm:$0xff] }
  0x27   :  { %601 = vmatpush.bf16.xpose.msra.mxu0 %v415_v16  ;;  %v248_v16 = vld [vmem:[%s3746_s2 + $0x20] sm:$0xff]  ;;  %v2546_v27 = vld [vmem:[%s3745_s1 + $0x8] sm:$0xff]  ;;  %v115_v34 = vld [vmem:[%s3744_s0 + $0x278] sm:$0xff] }
  0x28   :  { %650 = vmatpush.bf16.xpose.msra.mxu1 %v439_v17  ;;  %v146_v17 = vld [vmem:[%s3744_s0 + $0x370] sm:$0xff]  ;;  %v145_v29 = vld [vmem:[%s3744_s0 + $0x368] sm:$0xff]  ;;  %v160_v30 = vld [vmem:[%s3744_s0 + $0x3e0] sm:$0xff]  ;;  %v203_v36 = vpack.c.bf16 %v115_v34, %v114_v33 }
  0x29   :  { %699 = vmatpush.bf16.xpose.msra.mxu2 %v463_v18  ;;  %v147_v18 = vld [vmem:[%s3744_s0 + $0x378] sm:$0xff]  ;;  %v218_v31 = vpack.c.bf16 %v145_v29, %v144_v28  ;;  %v161_v32 = vld [vmem:[%s3744_s0 + $0x3e8] sm:$0xff]  ;;  %v2587_v44 = vld [vmem:[%s3745_s1 + $0x10] sm:$0xff] }
  0x2a   :  { %748 = vmatpush.bf16.xpose.msra.mxu3 %v487_v22  ;;  %v219_v21 = vpack.c.bf16 %v147_v18, %v146_v17  ;;  %v227_v22 = vpack.c.bf16 %v163_v20, %v162_v19  ;;  %v142_v45 = vld [vmem:[%s3744_s0 + $0x350] sm:$0xff]  ;;  %v143_v46 = vld [vmem:[%s3744_s0 + $0x358] sm:$0xff]  ;;  %v112_v50 = vld [vmem:[%s3744_s0 + $0x260] sm:$0xff] }
  0x2b   :  { %292 = vperm.xlu2 %2162, %v250_v12   ;;  %v568_v39 = vsel %vm380_vm0, %v218_v31, 0  ;;  %v158_v47 = vld [vmem:[%s3744_s0 + $0x3d0] sm:$0xff]  ;;  %v217_v48 = vpack.c.bf16 %v143_v46, %v142_v45  ;;  %v159_v49 = vld [vmem:[%s3744_s0 + $0x3d8] sm:$0xff]  ;;  %v113_v51 = vld [vmem:[%s3744_s0 + $0x268] sm:$0xff] }
  0x2c   :  { %v571_v23 = vsel %vm380_vm0, %v219_v21, 0  ;;  %v595_v24 = vsel %vm380_vm0, %v227_v22, 0  ;;  %v129_v55 = vld [vmem:[%s3744_s0 + $0x2e8] sm:$0xff]  ;;  %v2628_v61 = vld [vmem:[%s3745_s1 + $0x18] sm:$0xff]  ;;  %v110_v62 = vld [vmem:[%s3744_s0 + $0x250] sm:$0xff] }
  0x2d   :  { %272 = vperm.xlu0 %2160, %v246_v3   ;;  %v565_v56 = vsel %vm380_vm0, %v217_v48, 0  ;;  %v111_v63 = vld [vmem:[%s3744_s0 + $0x258] sm:$0xff]  ;;  %v126_v0 = vld [vmem:[%s3744_s0 + $0x2d0] sm:$0xff]  ;;  %v140_v5 = vld [vmem:[%s3744_s0 + $0x340] sm:$0xff] }
  0x2e   :  { %307 = vperm.xlu1 %2161, %v253_v11   ;;  %v201_v1 = vpack.c.bf16 %v111_v63, %v110_v62  ;;  %v127_v2 = vld [vmem:[%s3744_s0 + $0x2d8] sm:$0xff]  ;;  %v141_v6 = vld [vmem:[%s3744_s0 + $0x348] sm:$0xff]  ;;  %v108_v11 = vld [vmem:[%s3744_s0 + $0x240] sm:$0xff] }
  0x2f   :  { %602 = vmatpush.bf16.xpose.msra.mxu0 %v412_v35  ;;  %v226_v35 = vpack.c.bf16 %v161_v32, %v160_v30  ;;  %v209_v3 = vpack.c.bf16 %v127_v2, %v126_v0  ;;  %v109_v12 = vld [vmem:[%s3744_s0 + $0x248] sm:$0xff]  ;;  %v123_v29 = vld [vmem:[%s3744_s0 + $0x2b8] sm:$0xff]  ;;  %v138_v30 = vld [vmem:[%s3744_s0 + $0x330] sm:$0xff] }
  0x30   :  { %651 = vmatpush.bf16.xpose.msra.mxu1 %v436_v37  ;;  %v130_v37 = vld [vmem:[%s3744_s0 + $0x2f0] sm:$0xff]  ;;  %v517_v4 = vsel %vm380_vm0, %v201_v1, 0  ;;  %v125_v17 = vld [vmem:[%s3744_s0 + $0x2c8] sm:$0xff]  ;;  %v139_v31 = vld [vmem:[%s3744_s0 + $0x338] sm:$0xff] }
  0x31   :  { %700 = vmatpush.bf16.xpose.msra.mxu2 %v460_v38  ;;  %v131_v38 = vld [vmem:[%s3744_s0 + $0x2f8] sm:$0xff]  ;;  %v592_v41 = vsel %vm380_vm0, %v226_v35, 0  ;;  %v215_v33 = vpack.c.bf16 %v139_v31, %v138_v30  ;;  %v154_v34 = vld [vmem:[%s3744_s0 + $0x3b0] sm:$0xff]  ;;  %v120_v45 = vld [vmem:[%s3744_s0 + $0x2a0] sm:$0xff] }
  0x32   :  { %749 = vmatpush.bf16.xpose.msra.mxu3 %v484_v42  ;;  %v211_v40 = vpack.c.bf16 %v131_v38, %v130_v37  ;;  %v523_v42 = vsel %vm380_vm0, %v203_v36, 0  ;;  %v155_v35 = vld [vmem:[%s3744_s0 + $0x3b8] sm:$0xff]  ;;  %v1193_v36 = vld [vmem:[%s3748_s4 + $0x20] sm:$0xff]  ;;  %v121_v48 = vld [vmem:[%s3744_s0 + $0x2a8] sm:$0xff] }
  0x33   :  { %287 = vperm.xlu2 %2162, %v249_v15   ;;  %v200_v15 = vpack.c.bf16 %v109_v12, %v108_v11  ;;  %v223_v38 = vpack.c.bf16 %v155_v35, %v154_v34  ;;  %v2761_v62 = vld [vmem:[%s3745_s1 + $0x28] sm:$0xff]  ;;  %v102_v63 = vld [vmem:[%s3744_s0 + $0x210] sm:$0xff]  ;;  %v103_v0 = vld [vmem:[%s3744_s0 + $0x218] sm:$0xff] }
  0x34   :  { %v547_v43 = vsel %vm380_vm0, %v211_v40, 0  ;;  %v118_v1 = vld [vmem:[%s3744_s0 + $0x290] sm:$0xff]  ;;  %v197_v2 = vpack.c.bf16 %v103_v0, %v102_v63  ;;  %v1194_v11 = vld [vmem:[%s3748_s4 + $0x28] sm:$0xff]  ;;  %v1593_v12 = vld [vmem:[%s3750_s6] sm:$0xff] }
  0x35   :  { %267 = vperm.xlu0 %2160, %v245_v13   ;;  %v514_v21 = vsel %vm380_vm0, %v200_v15, 0  ;;  %v583_v46 = vsel %vm380_vm0, %v223_v38, 0  ;;  %v149_v30 = vld [vmem:[%s3744_s0 + $0x388] sm:$0xff]  ;;  %v1596_v34 = vld [vmem:[%s3750_s6 + $0x18] sm:$0xff] }
  0x36   :  { %282 = vperm.xlu1 %2161, %v248_v16   ;;  %v124_v16 = vld [vmem:[%s3744_s0 + $0x2c0] sm:$0xff]  ;;  %v1190_v0 = vld [vmem:[%s3748_s4 + $0x8] sm:$0xff] }
  0x37   :  { %603 = vmatpush.bf16.xpose.msra.mxu0 %v409_v52  ;;  %v225_v52 = vpack.c.bf16 %v159_v49, %v158_v47  ;;  %v208_v19 = vpack.c.bf16 %v125_v17, %v124_v16  ;;  %v136_v49 = vld [vmem:[%s3744_s0 + $0x320] sm:$0xff] }
  0x38   :  { %652 = vmatpush.bf16.xpose.msra.mxu1 %v433_v53  ;;  %v202_v53 = vpack.c.bf16 %v113_v51, %v112_v50  ;;  %v137_v50 = vld [vmem:[%s3744_s0 + $0x328] sm:$0xff]  ;;  %v206_v51 = vpack.c.bf16 %v121_v48, %v120_v45  ;;  %v2874_v48 = vld [vmem:[%s3745_s1 + $0x38] sm:$0xff] }
  0x39   :  { %701 = vmatpush.bf16.xpose.msra.mxu2 %v457_v54  ;;  %v128_v54 = vld [vmem:[%s3744_s0 + $0x2e0] sm:$0xff]  ;;  %v538_v22 = vsel %vm380_vm0, %v208_v19, 0  ;;  %v101_v19 = vld [vmem:[%s3744_s0 + $0x208] sm:$0xff] }
  0x3a   :  { %750 = vmatpush.bf16.xpose.msra.mxu3 %v481_v58  ;;  %v210_v57 = vpack.c.bf16 %v129_v55, %v128_v54  ;;  %v589_v58 = vsel %vm380_vm0, %v225_v52, 0  ;;  %v520_v59 = vsel %vm380_vm0, %v202_v53, 0  ;;  %v214_v52 = vpack.c.bf16 %v137_v50, %v136_v49  ;;  %v152_v53 = vld [vmem:[%s3744_s0 + $0x3a0] sm:$0xff]  ;;  %v153_v54 = vld [vmem:[%s3744_s0 + $0x3a8] sm:$0xff] }
  0x3b   :  { %262 = vperm.xlu2 %2162, %v244_v26   ;;  %v122_v26 = vld [vmem:[%s3744_s0 + $0x2b0] sm:$0xff]  ;;  %v222_v55 = vpack.c.bf16 %v153_v54, %v152_v53  ;;  %v1196_v53 = vld [vmem:[%s3748_s4 + $0x38] sm:$0xff] }
  0x3c   :  { %v544_v60 = vsel %vm380_vm0, %v210_v57, 0  ;;  %v207_v32 = vpack.c.bf16 %v123_v29, %v122_v26  ;;  %v148_v29 = vld [vmem:[%s3744_s0 + $0x380] sm:$0xff] }
  0x3d   :  { %1219 = vperm.xlu0 %2160, %v1193_v36  }
  0x3e   :  { %277 = vperm.xlu1 %2161, %v247_v25   ;;  %v107_v25 = vld [vmem:[%s3744_s0 + $0x238] sm:$0xff]  ;;  %v535_v40 = vsel %vm380_vm0, %v207_v32, 0  ;;  %v220_v32 = vpack.c.bf16 %v149_v30, %v148_v29 }
  0x3f   :  { %604 = vmatpush.bf16.xpose.msra.mxu0 %v406_v7  ;;  %v156_v7 = vld [vmem:[%s3744_s0 + $0x3c0] sm:$0xff] }
  0x40   :  { %653 = vmatpush.bf16.xpose.msra.mxu1 %v430_v8  ;;  %v541_v8 = vsel %vm380_vm0, %v209_v3, 0  ;;  %v119_v3 = vld [vmem:[%s3744_s0 + $0x298] sm:$0xff] }
  0x41   :  { %702 = vmatpush.bf16.xpose.msra.mxu2 %v454_v9  ;;  %v216_v9 = vpack.c.bf16 %v141_v6, %v140_v5  ;;  %v135_v5 = vld [vmem:[%s3744_s0 + $0x318] sm:$0xff]  ;;  %v205_v6 = vpack.c.bf16 %v119_v3, %v118_v1 }
  0x42   :  { %751 = vmatpush.bf16.xpose.msra.mxu3 %v478_v10  ;;  %v157_v10 = vld [vmem:[%s3744_s0 + $0x3c8] sm:$0xff] }
  0x43   :  { %v224_v13 = vpack.c.bf16 %v157_v10, %v156_v7  ;;  %v562_v18 = vsel %vm380_vm0, %v216_v9, 0  ;;  %v151_v9 = vld [vmem:[%s3744_s0 + $0x398] sm:$0xff]  ;;  %v529_v16 = vsel %vm380_vm0, %v205_v6, 0  ;;  %1234 = vperm.xlu2 %2162, %v1196_v53  }
  0x45   :  { %v586_v20 = vsel %vm380_vm0, %v224_v13, 0  ;;  %v505_v13 = vsel %vm380_vm0, %v197_v2, 0 }
  0x46   :  { %2040 = vmatmul.msk.bf16.vlgmr.msra.gmra.mxu0 %vm380_vm0, %v2507_v14 }
  0x47   :  { %2048 = vmatmul.msk.bf16.vlgmr.msra.gmra.mxu1 %vm380_vm0, %v2507_v14  ;;  %793 = vmatpush.bf16.xpose.msrb.mxu0 %v523_v42  ;;  %v104_v42 = vld [vmem:[%s3744_s0 + $0x220] sm:$0xff] }
  0x48   :  { %2056 = vmatmul.msk.bf16.vlgmr.msra.gmra.mxu2 %vm380_vm0, %v2507_v14  ;;  %842 = vmatpush.bf16.xpose.msrb.mxu1 %v547_v43  ;;  %v105_v43 = vld [vmem:[%s3744_s0 + $0x228] sm:$0xff] }
  0x49   :  { %2064 = vmatmul.msk.bf16.vlgmr.msra.gmra.mxu3 %vm380_vm0, %v2507_v14  ;;  %891 = vmatpush.bf16.xpose.msrb.mxu2 %v571_v23  ;;  %v2683_v23 = vld [vmem:[%s3745_s1 + $0x20] sm:$0xff]  ;;  %v198_v47 = vpack.c.bf16 %v105_v43, %v104_v42  ;;  %v1594_v42 = vld [vmem:[%s3750_s6 + $0x8] sm:$0xff]  ;;  %v1820_v43 = vld [vmem:[%s3751_s7 + $0x10] sm:$0xff] }
  0x4a   :  { %940 = vmatpush.bf16.xpose.msrb.mxu3 %v595_v24  ;;  %v106_v24 = vld [vmem:[%s3744_s0 + $0x230] sm:$0xff] }
  0x4b   :  { %v199_v28 = vpack.c.bf16 %v107_v25, %v106_v24  ;;  %v508_v57 = vsel %vm380_vm0, %v198_v47, 0  ;;  %v132_v24 = vld [vmem:[%s3744_s0 + $0x300] sm:$0xff] }
  0x4c   :  { %v1818_v47 = vld [vmem:[%s3751_s7] sm:$0xff] }
  0x4d   :  { %v511_v37 = vsel %vm380_vm0, %v199_v28, 0  ;;  %v133_v28 = vld [vmem:[%s3744_s0 + $0x308] sm:$0xff] }
  0x4e   :  { %v212_v31 = vpack.c.bf16 %v133_v28, %v132_v24 }
  0x4f   :  { %794 = vmatpush.bf16.xpose.msrb.mxu0 %v520_v59  ;;  %v556_v59 = vsel %vm380_vm0, %v214_v52, 0  ;;  %v1821_v52 = vld [vmem:[%s3751_s7 + $0x18] sm:$0xff] }
  0x50   :  { %843 = vmatpush.bf16.xpose.msrb.mxu1 %v544_v60  ;;  %v580_v60 = vsel %vm380_vm0, %v222_v55, 0  ;;  %v550_v38 = vsel %vm380_vm0, %v212_v31, 0 }
  0x51   :  { %892 = vmatpush.bf16.xpose.msrb.mxu2 %v568_v39  ;;  %v1195_v39 = vld [vmem:[%s3748_s4 + $0x30] sm:$0xff] }
  0x52   :  { %941 = vmatpush.bf16.xpose.msrb.mxu3 %v592_v41  ;;  %v559_v41 = vsel %vm380_vm0, %v215_v33, 0  ;;  %1229 = vperm.xlu1 %2161, %v1195_v39   ;;  %v1189_v33 = vld [vmem:[%s3748_s4] sm:$0xff]  ;;  %v574_v39 = vsel %vm380_vm0, %v220_v32, 0 }
  0x56   :  { %2041 = vmatmul.msk.bf16.gmra.mxu0 %vm380_vm0, %v2546_v27 }
  0x57   :  { %2049 = vmatmul.msk.bf16.gmra.mxu1 %vm380_vm0, %v2546_v27  ;;  %795 = vmatpush.bf16.xpose.msrb.mxu0 %v517_v4  ;;  %v134_v4 = vld [vmem:[%s3744_s0 + $0x310] sm:$0xff] }
  0x58   :  { %2057 = vmatmul.msk.bf16.gmra.mxu2 %vm380_vm0, %v2546_v27  ;;  %844 = vmatpush.bf16.xpose.msrb.mxu1 %v541_v8  ;;  %v213_v7 = vpack.c.bf16 %v135_v5, %v134_v4  ;;  %v150_v8 = vld [vmem:[%s3744_s0 + $0x390] sm:$0xff] }
  0x59   :  { %2065 = vmatmul.msk.bf16.gmra.mxu3 %vm380_vm0, %v2546_v27  ;;  %893 = vmatpush.bf16.xpose.msrb.mxu2 %v565_v56  ;;  %v1192_v56 = vld [vmem:[%s3748_s4 + $0x18] sm:$0xff]  ;;  %v221_v15 = vpack.c.bf16 %v151_v9, %v150_v8 }
  0x5a   :  { %942 = vmatpush.bf16.xpose.msrb.mxu3 %v589_v58  ;;  %v532_v58 = vsel %vm380_vm0, %v206_v51, 0  ;;  %1214 = vperm.xlu0 %2160, %v1192_v56   ;;  %v553_v17 = vsel %vm380_vm0, %v213_v7, 0  ;;  %v1191_v56 = vld [vmem:[%s3748_s4 + $0x10] sm:$0xff] }
  0x5b   :  { %1224 = vperm.xlu1 %2161, %v1194_v11   ;;  %1209 = vperm.xlu2 %2162, %v1191_v56  }
  0x5f   :  { %796 = vmatpush.bf16.xpose.msrb.mxu0 %v514_v21  ;;  %v116_v21 = vld [vmem:[%s3744_s0 + $0x280] sm:$0xff] }
  0x60   :  { %845 = vmatpush.bf16.xpose.msrb.mxu1 %v538_v22  ;;  %v117_v22 = vld [vmem:[%s3744_s0 + $0x288] sm:$0xff] }
  0x61   :  { %894 = vmatpush.bf16.xpose.msrb.mxu2 %v562_v18  ;;  %v100_v18 = vld [vmem:[%s3744_s0 + $0x200] sm:$0xff]  ;;  %v204_v26 = vpack.c.bf16 %v117_v22, %v116_v21 }
  0x62   :  { %943 = vmatpush.bf16.xpose.msrb.mxu3 %v586_v20  ;;  %1599 = vperm.xlu0 %2160, %v1593_v12   ;;  %v577_v20 = vsel %vm380_vm0, %v221_v15, 0  ;;  %v196_v25 = vpack.c.bf16 %v101_v19, %v100_v18 }
  0x63   :  { %1199 = vperm.xlu1 %2161, %v1189_v33   ;;  %1204 = vperm.xlu2 %2162, %v1190_v0   ;;  %v1946_v0 = vld [vmem:[#allocation2] sm:$0x1] }
  0x64   :  { %v502_v36 = vsel %vm380_vm0, %v196_v25, 0 }
  0x66   :  { %2042 = vmatmul.msk.bf16.gmra.mxu0 %vm380_vm0, %v2587_v44 }
  0x67   :  { %2050 = vmatmul.msk.bf16.gmra.mxu1 %vm380_vm0, %v2587_v44  ;;  %797 = vmatpush.bf16.xpose.msrb.mxu0 %v511_v37  ;;  %v526_v37 = vsel %vm380_vm0, %v204_v26, 0 }
  0x68   :  { %2058 = vmatmul.msk.bf16.gmra.mxu2 %vm380_vm0, %v2587_v44  ;;  %846 = vmatpush.bf16.xpose.msrb.mxu1 %v535_v40  ;;  %v2846_v40 = vld [vmem:[%s3745_s1 + $0x30] sm:$0xff] }
  0x69   :  { %2066 = vmatmul.msk.bf16.gmra.mxu3 %vm380_vm0, %v2587_v44  ;;  %895 = vmatpush.bf16.xpose.msrb.mxu2 %v559_v41 }
  0x6a   :  { %944 = vmatpush.bf16.xpose.msrb.mxu3 %v583_v46  ;;  %1614 = vperm.xlu0 %2160, %v1596_v34  }
  0x6b   :  { %1604 = vperm.xlu1 %2161, %v1594_v42  }
  0x6f   :  { %798 = vmatpush.bf16.xpose.msrb.mxu0 %v508_v57 }
  0x70   :  { %847 = vmatpush.bf16.xpose.msrb.mxu1 %v532_v58 }
  0x71   :  { %896 = vmatpush.bf16.xpose.msrb.mxu2 %v556_v59 }
  0x72   :  { %945 = vmatpush.bf16.xpose.msrb.mxu3 %v580_v60  ;;  %1834 = vperm.xlu0 %2160, %v1820_v43  }
  0x73   :  { %1824 = vperm.xlu1 %2161, %v1818_v47  }
  0x75   :  { %v2837_v35 = vpop.permute.xlu2 %312 }
  0x76   :  { %2043 = vmatmul.msk.bf16.gmra.mxu0 %vm380_vm0, %v2628_v61 }
  0x77   :  { %2051 = vmatmul.msk.bf16.gmra.mxu1 %vm380_vm0, %v2628_v61  ;;  %799 = vmatpush.bf16.xpose.msrb.mxu0 %v505_v13  ;;  %v1595_v13 = vld [vmem:[%s3750_s6 + $0x10] sm:$0xff] }
  0x78   :  { %2059 = vmatmul.msk.bf16.gmra.mxu2 %vm380_vm0, %v2628_v61  ;;  %848 = vmatpush.bf16.xpose.msrb.mxu1 %v529_v16 }
  0x79   :  { %2067 = vmatmul.msk.bf16.gmra.mxu3 %vm380_vm0, %v2628_v61  ;;  %897 = vmatpush.bf16.xpose.msrb.mxu2 %v553_v17 }
  0x7a   :  { %946 = vmatpush.bf16.xpose.msrb.mxu3 %v577_v20  ;;  %1609 = vperm.xlu2 %2162, %v1595_v13  }
  0x7b   :  { %1839 = vperm.xlu1 %2161, %v1821_v52  }
  0x7d   :  { %v2864_v45 = vpop.permute.xlu2 %317 }
  0x7f   :  { %v2795_v10 = vpop.permute.xlu0 %332  ;;  %800 = vmatpush.bf16.xpose.msrb.mxu0 %v502_v36  ;;  %v1819_v36 = vld [vmem:[%s3751_s7 + $0x8] sm:$0xff] }
  0x80   :  { %849 = vmatpush.bf16.xpose.msrb.mxu1 %v526_v37 }
  0x81   :  { %898 = vmatpush.bf16.xpose.msrb.mxu2 %v550_v38 }
  0x82   :  { %947 = vmatpush.bf16.xpose.msrb.mxu3 %v574_v39  ;;  %1829 = vperm.xlu2 %2162, %v1819_v36  }
  0x85   :  { %v2878_v50 = vpop.permute.xlu2 %292 }
  0x86   :  { %2044 = vmatmul.msk.bf16.gmra.mxu0 %vm380_vm0, %v2683_v23  ;;  %3784 = vst [vmem:[#allocation6_spill] sm:$0xff] %v2878_v50 }
  0x87   :  { %2052 = vmatmul.msk.bf16.gmra.mxu1 %vm380_vm0, %v2683_v23  ;;  %v2848_v41 = vpop.permute.xlu0 %337 }
  0x88   :  { %2060 = vmatmul.msk.bf16.gmra.mxu2 %vm380_vm0, %v2683_v23 }
  0x89   :  { %2068 = vmatmul.msk.bf16.gmra.mxu3 %vm380_vm0, %v2683_v23 }
  0x8a   :  { %1949 = vperm.xlu2 %2162, %v1946_v0  }
  0x8d   :  { %v2898_v55 = vpop.permute.xlu2 %287 }
  0x8e   :  { %3786 = vst [vmem:[#allocation8_spill] sm:$0xff] %v2898_v55 }
  0x8f   :  { %v2866_v46 = vpop.permute.xlu0 %302 }
  0x90   :  { %v2876_v49 = vpop.permute.xlu1 %322 }
  0x95   :  { %v2913_v63 = vpop.permute.xlu2 %262 }
  0x96   :  { %2045 = vmatmul.msk.bf16.gmra.mxu0 %vm380_vm0, %v2761_v62  ;;  %3788 = vst [vmem:[#allocation10_spill] sm:$0xff] %v2913_v63 }
  0x97   :  { %2053 = vmatmul.msk.bf16.gmra.mxu1 %vm380_vm0, %v2761_v62  ;;  %v2882_v51 = vpop.permute.xlu0 %297 }
  0x98   :  { %2061 = vmatmul.msk.bf16.gmra.mxu2 %vm380_vm0, %v2761_v62  ;;  %3785 = vst [vmem:[#allocation7_spill] sm:$0xff] %v2882_v51  ;;  %v2896_v54 = vpop.permute.xlu1 %327 }
  0x99   :  { %2069 = vmatmul.msk.bf16.gmra.mxu3 %vm380_vm0, %v2761_v62 }
  0x9f   :  { %v2903_v57 = vpop.permute.xlu0 %272 }
  0xa0   :  { %3787 = vst [vmem:[#allocation9_spill] sm:$0xff] %v2903_v57  ;;  %v2907_v60 = vpop.permute.xlu1 %307 }
  0xa6   :  { %2046 = vmatmul.msk.bf16.gmra.mxu0 %vm380_vm0, %v2846_v40 }
  0xa7   :  { %2054 = vmatmul.msk.bf16.gmra.mxu1 %vm380_vm0, %v2846_v40  ;;  %v2922_v4 = vpop.permute.xlu0 %267 }
  0xa8   :  { %2062 = vmatmul.msk.bf16.gmra.mxu2 %vm380_vm0, %v2846_v40  ;;  %3789 = vst [vmem:[#allocation11_spill] sm:$0xff] %v2922_v4  ;;  %v2929_v16 = vpop.permute.xlu1 %282 }
  0xa9   :  { %2070 = vmatmul.msk.bf16.gmra.mxu3 %vm380_vm0, %v2846_v40  ;;  %3790 = vst [vmem:[#allocation12_spill] sm:$0xff] %v2929_v16 }
  0xb0   :  { %v2956_v42 = vpop.permute.xlu1 %277 }
  0xb1   :  { %3793 = vst [vmem:[#allocation15_spill] sm:$0xff] %v2956_v42 }
  0xb6   :  { %2047 = vmatmul.msk.bf16.gmra.mxu0 %vm380_vm0, %v2874_v48 }
  0xb7   :  { %2055 = vmatmul.msk.bf16.gmra.mxu1 %vm380_vm0, %v2874_v48 }
  0xb8   :  { %2063 = vmatmul.msk.bf16.gmra.mxu2 %vm380_vm0, %v2874_v48 }
  0xb9   :  { %2071 = vmatmul.msk.bf16.gmra.mxu3 %vm380_vm0, %v2874_v48 }
  0xc3   :  { %v606_v58 = vpop.f32.mrf.mxu0 }
  0xc4   :  { %v655_v59 = vpop.f32.mrf.mxu1  ;;  %v607_v1 = vadd.f32 %v606_v58, %v2913_v63 }
  0xc5   :  { %v656_v2 = vadd.f32 %v655_v59, %v2913_v63 }
  0xc6   :  { %2072 = vmatmul.msk.bf16.vlgmr.msrb.gmra.mxu0 %vm380_vm0, %v2507_v14  ;;  %v989_v9 = vmax.f32 %v607_v1, 0.0 }
  0xc7   :  { %2080 = vmatmul.msk.bf16.vlgmr.msrb.gmra.mxu1 %vm380_vm0, %v2507_v14  ;;  %v990_v11 = vmax.f32 %v656_v2, 0.0 }
  0xc8   :  { %2088 = vmatmul.msk.bf16.vlgmr.msrb.gmra.mxu2 %vm380_vm0, %v2507_v14 }
  0xc9   :  { %2096 = vmatmul.msk.bf16.vlgmr.msrb.gmra.mxu3 %vm380_vm0, %v2507_v14 }
  0xcb   :  { %v704_v3 = vpop.f32.mrf.mxu2  ;;  %v608_v6 = vpop.f32.mrf.mxu0 }
  0xcc   :  { %v753_v5 = vpop.f32.mrf.mxu3  ;;  %v657_v7 = vpop.f32.mrf.mxu1  ;;  %v609_v8 = vadd.f32 %v608_v6, %v2922_v4  ;;  %v705_v18 = vadd.f32 %v704_v3, %v2913_v63 }
  0xcd   :  { %v658_v14 = vadd.f32 %v657_v7, %v2922_v4  ;;  %v754_v20 = vadd.f32 %v753_v5, %v2913_v63 }
  0xce   :  { %v997_v12 = vmax.f32 %v609_v8, 0.0  ;;  %v991_v29 = vmax.f32 %v705_v18, 0.0 }
  0xcf   :  { %v998_v15 = vmax.f32 %v658_v14, 0.0  ;;  %v992_v31 = vmax.f32 %v754_v20, 0.0 }
  0xd0   :  { %v2931_v17 = vpack.c.bf16 %v997_v12, %v989_v9 }
  0xd1   :  { %v2934_v19 = vpack.c.bf16 %v998_v15, %v990_v11 }
  0xd3   :  { %v706_v21 = vpop.f32.mrf.mxu2  ;;  %v611_v25 = vpop.f32.mrf.mxu0 }
  0xd4   :  { %v707_v22 = vadd.f32 %v706_v21, %v2922_v4  ;;  %v755_v24 = vpop.f32.mrf.mxu3  ;;  %v660_v28 = vpop.f32.mrf.mxu1  ;;  %v612_v34 = vadd.f32 %v611_v25, %v2903_v57 }
  0xd5   :  { %v756_v26 = vadd.f32 %v755_v24, %v2922_v4  ;;  %v661_v38 = vadd.f32 %v660_v28, %v2903_v57 }
  0xd6   :  { %v999_v30 = vmax.f32 %v707_v22, 0.0  ;;  %2073 = vmatmul.msk.bf16.gmra.mxu0 %vm380_vm0, %v2546_v27  ;;  %v1005_v52 = vmax.f32 %v612_v34, 0.0 }
  0xd7   :  { %v1000_v32 = vmax.f32 %v756_v26, 0.0  ;;  %2081 = vmatmul.msk.bf16.gmra.mxu1 %vm380_vm0, %v2546_v27  ;;  %v1006_v58 = vmax.f32 %v661_v38, 0.0 }
  0xd8   :  { %2089 = vmatmul.msk.bf16.gmra.mxu2 %vm380_vm0, %v2546_v27  ;;  %v2945_v33 = vpack.c.bf16 %v999_v30, %v991_v29 }
  0xd9   :  { %2097 = vmatmul.msk.bf16.gmra.mxu3 %vm380_vm0, %v2546_v27  ;;  %v2953_v37 = vpack.c.bf16 %v1000_v32, %v992_v31 }
  0xda   :  { %3791 = vst [vmem:[#allocation13_spill] sm:$0xff] %v2945_v33 }
  0xdb   :  { %3792 = vst [vmem:[#allocation14_spill] sm:$0xff] %v2953_v37  ;;  %v709_v39 = vpop.f32.mrf.mxu2  ;;  %v613_v47 = vpop.f32.mrf.mxu0 }
  0xdc   :  { %v758_v43 = vpop.f32.mrf.mxu3  ;;  %v662_v53 = vpop.f32.mrf.mxu1  ;;  %v614_v56 = vadd.f32 %v613_v47, %v2956_v42  ;;  %v710_v3 = vadd.f32 %v709_v39, %v2903_v57 }
  0xdd   :  { %v663_v27 = vadd.f32 %v662_v53, %v2956_v42  ;;  %v759_v6 = vadd.f32 %v758_v43, %v2903_v57 }
  0xde   :  { %v1013_v59 = vmax.f32 %v614_v56, 0.0  ;;  %v1007_v13 = vmax.f32 %v710_v3, 0.0 }
  0xdf   :  { %v1014_v1 = vmax.f32 %v663_v27, 0.0  ;;  %v1008_v18 = vmax.f32 %v759_v6, 0.0 }
  0xe0   :  { %v2960_v2 = vpack.c.bf16 %v1013_v59, %v1005_v52 }
  0xe1   :  { %v2963_v5 = vpack.c.bf16 %v1014_v1, %v1006_v58 }
  0xe3   :  { %v711_v7 = vpop.f32.mrf.mxu2  ;;  %v616_v14 = vpop.f32.mrf.mxu0 }
  0xe4   :  { %v712_v8 = vadd.f32 %v711_v7, %v2956_v42  ;;  %v760_v9 = vpop.f32.mrf.mxu3  ;;  %v665_v12 = vpop.f32.mrf.mxu1  ;;  %v617_v22 = vadd.f32 %v616_v14, %v2929_v16 }
  0xe5   :  { %v761_v11 = vadd.f32 %v760_v9, %v2956_v42  ;;  %v666_v25 = vadd.f32 %v665_v12, %v2929_v16 }
  0xe6   :  { %v1015_v15 = vmax.f32 %v712_v8, 0.0  ;;  %2074 = vmatmul.msk.bf16.gmra.mxu0 %vm380_vm0, %v2587_v44  ;;  %v1021_v30 = vmax.f32 %v617_v22, 0.0 }
  0xe7   :  { %v1016_v20 = vmax.f32 %v761_v11, 0.0  ;;  %2082 = vmatmul.msk.bf16.gmra.mxu1 %vm380_vm0, %v2587_v44  ;;  %v1022_v34 = vmax.f32 %v666_v25, 0.0 }
  0xe8   :  { %2090 = vmatmul.msk.bf16.gmra.mxu2 %vm380_vm0, %v2587_v44  ;;  %v2974_v21 = vpack.c.bf16 %v1015_v15, %v1007_v13 }
  0xe9   :  { %2098 = vmatmul.msk.bf16.gmra.mxu3 %vm380_vm0, %v2587_v44  ;;  %v2979_v24 = vpack.c.bf16 %v1016_v20, %v1008_v18 }
  0xea   :  { %3794 = vst [vmem:[#allocation16_spill] sm:$0xff] %v2974_v21 }
  0xeb   :  { %3795 = vst [vmem:[#allocation17_spill] sm:$0xff] %v2979_v24  ;;  %v714_v26 = vpop.f32.mrf.mxu2  ;;  %v618_v29 = vpop.f32.mrf.mxu0 }
  0xec   :  { %v763_v28 = vpop.f32.mrf.mxu3  ;;  %v619_v31 = vadd.f32 %v618_v29, %v2898_v55  ;;  %v667_v32 = vpop.f32.mrf.mxu1  ;;  %v715_v44 = vadd.f32 %v714_v26, %v2929_v16 }
  0xed   :  { %v668_v36 = vadd.f32 %v667_v32, %v2898_v55  ;;  %v764_v52 = vadd.f32 %v763_v28, %v2929_v16 }
  0xee   :  { %v1029_v38 = vmax.f32 %v619_v31, 0.0  ;;  %v1023_v1 = vmax.f32 %v715_v44, 0.0 }
  0xef   :  { %v1030_v39 = vmax.f32 %v668_v36, 0.0  ;;  %v1024_v6 = vmax.f32 %v764_v52, 0.0 }
  0xf0   :  { %v2984_v43 = vpack.c.bf16 %v1029_v38, %v1021_v30 }
  0xf1   :  { %v2987_v47 = vpack.c.bf16 %v1030_v39, %v1022_v34 }
  0xf3   :  { %v716_v53 = vpop.f32.mrf.mxu2  ;;  %v621_v27 = vpop.f32.mrf.mxu0 }
  0xf4   :  { %v717_v56 = vadd.f32 %v716_v53, %v2898_v55  ;;  %v765_v58 = vpop.f32.mrf.mxu3  ;;  %v670_v0 = vpop.f32.mrf.mxu1  ;;  %v622_v9 = vadd.f32 %v621_v27, %v2878_v50 }
  0xf5   :  { %v766_v59 = vadd.f32 %v765_v58, %v2898_v55  ;;  %v671_v11 = vadd.f32 %v670_v0, %v2878_v50 }
  0xf6   :  { %v1031_v3 = vmax.f32 %v717_v56, 0.0  ;;  %2075 = vmatmul.msk.bf16.gmra.mxu0 %vm380_vm0, %v2628_v61  ;;  %v1037_v18 = vmax.f32 %v622_v9, 0.0 }
  0xf7   :  { %v1032_v7 = vmax.f32 %v766_v59, 0.0  ;;  %2083 = vmatmul.msk.bf16.gmra.mxu1 %vm380_vm0, %v2628_v61  ;;  %v1038_v25 = vmax.f32 %v671_v11, 0.0 }
  0xf8   :  { %2091 = vmatmul.msk.bf16.gmra.mxu2 %vm380_vm0, %v2628_v61  ;;  %v2998_v8 = vpack.c.bf16 %v1031_v3, %v1023_v1 }
  0xf9   :  { %2099 = vmatmul.msk.bf16.gmra.mxu3 %vm380_vm0, %v2628_v61  ;;  %v3003_v14 = vpack.c.bf16 %v1032_v7, %v1024_v6 }
  0xfb   :  { %v719_v12 = vpop.f32.mrf.mxu2  ;;  %v623_v15 = vpop.f32.mrf.mxu0 }
  0xfc   :  { %v768_v13 = vpop.f32.mrf.mxu3  ;;  %v624_v20 = vadd.f32 %v623_v15, %v2882_v51  ;;  %v672_v22 = vpop.f32.mrf.mxu1  ;;  %v720_v61 = vadd.f32 %v719_v12, %v2878_v50 }
  0xfd   :  { %v673_v26 = vadd.f32 %v672_v22, %v2882_v51  ;;  %v769_v32 = vadd.f32 %v768_v13, %v2878_v50 }
  0xfe   :  { %v1045_v28 = vmax.f32 %v624_v20, 0.0  ;;  %v1039_v53 = vmax.f32 %v720_v61, 0.0 }
  0xff   :  { %v1046_v29 = vmax.f32 %v673_v26, 0.0  ;;  %v1040_v58 = vmax.f32 %v769_v32, 0.0 }
 0x100   :  { %v3008_v30 = vpack.c.bf16 %v1045_v28, %v1037_v18 }
 0x101   :  { %v3011_v31 = vpack.c.bf16 %v1046_v29, %v1038_v25 }
 0x103   :  { %v721_v34 = vpop.f32.mrf.mxu2  ;;  %v626_v39 = vpop.f32.mrf.mxu0 }
 0x104   :  { %v722_v36 = vadd.f32 %v721_v34, %v2882_v51  ;;  %v770_v38 = vpop.f32.mrf.mxu3  ;;  %v675_v52 = vpop.f32.mrf.mxu1 }
 0x105   :  { %v771_v44 = vadd.f32 %v770_v38, %v2882_v51 }
 0x106   :  { %v1047_v56 = vmax.f32 %v722_v36, 0.0  ;;  %2076 = vmatmul.msk.bf16.gmra.mxu0 %vm380_vm0, %v2683_v23 }
 0x107   :  { %v1048_v27 = vmax.f32 %v771_v44, 0.0  ;;  %2084 = vmatmul.msk.bf16.gmra.mxu1 %vm380_vm0, %v2683_v23 }
 0x108   :  { %2092 = vmatmul.msk.bf16.gmra.mxu2 %vm380_vm0, %v2683_v23  ;;  %v3022_v59 = vpack.c.bf16 %v1047_v56, %v1039_v53 }
 0x109   :  { %2100 = vmatmul.msk.bf16.gmra.mxu3 %vm380_vm0, %v2683_v23  ;;  %v3026_v0 = vpack.c.bf16 %v1048_v27, %v1040_v58  ;;  %v3077_v58 = vadd.f32 %v626_v39, %v2866_v46  ;;  %v3086_v39 = vadd.f32 %v675_v52, %v2866_v46 }
 0x10b   :  { %v3028_v1 = vpop.f32.mrf.mxu2  ;;  %v3032_v6 = vpop.f32.mrf.mxu0 }
 0x10c   :  { %v3030_v3 = vpop.f32.mrf.mxu3  ;;  %v3034_v7 = vpop.f32.mrf.mxu1 }
 0x113   :  { %v3036_v9 = vpop.f32.mrf.mxu2  ;;  %v631_v12 = vpop.f32.mrf.mxu0 }
 0x114   :  { %v3038_v11 = vpop.f32.mrf.mxu3  ;;  %v680_v13 = vpop.f32.mrf.mxu1  ;;  %v632_v50 = vadd.f32 %v631_v12, %v2837_v35  ;;  %v678_v12 = vadd.f32 %v3034_v7, %v2907_v60 }
 0x116   :  { %2077 = vmatmul.msk.bf16.gmra.mxu0 %vm380_vm0, %v2761_v62 }
 0x117   :  { %2085 = vmatmul.msk.bf16.gmra.mxu1 %vm380_vm0, %v2761_v62 }
 0x118   :  { %2093 = vmatmul.msk.bf16.gmra.mxu2 %vm380_vm0, %v2761_v62 }
 0x119   :  { %2101 = vmatmul.msk.bf16.gmra.mxu3 %vm380_vm0, %v2761_v62 }
 0x11b   :  { %v3048_v23 = vpop.f32.mrf.mxu2  ;;  %v633_v18 = vpop.f32.mrf.mxu0 }
 0x11c   :  { %v3050_v15 = vpop.f32.mrf.mxu3  ;;  %v682_v20 = vpop.f32.mrf.mxu1 }
 0x123   :  { %v3052_v22 = vpop.f32.mrf.mxu2  ;;  %v636_v26 = vpop.f32.mrf.mxu0 }
 0x124   :  { %v3054_v25 = vpop.f32.mrf.mxu3  ;;  %v685_v28 = vpop.f32.mrf.mxu1  ;;  %v637_v55 = vadd.f32 %v636_v26, %v2876_v49  ;;  %v1053_v26 = vmax.f32 %v3077_v58, 0.0 }
 0x126   :  { %2078 = vmatmul.msk.bf16.gmra.mxu0 %vm380_vm0, %v2846_v40  ;;  %v1085_v33 = vmax.f32 %v637_v55, 0.0 }
 0x127   :  { %2086 = vmatmul.msk.bf16.gmra.mxu1 %vm380_vm0, %v2846_v40 }
 0x128   :  { %2094 = vmatmul.msk.bf16.gmra.mxu2 %vm380_vm0, %v2846_v40 }
 0x129   :  { %2102 = vmatmul.msk.bf16.gmra.mxu3 %vm380_vm0, %v2846_v40 }
 0x12b   :  { %v734_v62 = vpop.f32.mrf.mxu2  ;;  %v638_v61 = vpop.f32.mrf.mxu0 }
 0x12c   :  { %v3064_v29 = vpop.f32.mrf.mxu3  ;;  %v687_v32 = vpop.f32.mrf.mxu1  ;;  %v639_v16 = vadd.f32 %v638_v61, %v2896_v54  ;;  %v681_v61 = vadd.f32 %v680_v13, %v2837_v35  ;;  %v1069_v13 = vmax.f32 %v632_v50, 0.0 }
 0x133   :  { %v736_v34 = vpop.f32.mrf.mxu2  ;;  %v641_v38 = vpop.f32.mrf.mxu0 }
 0x134   :  { %v785_v36 = vpop.f32.mrf.mxu3  ;;  %v690_v44 = vpop.f32.mrf.mxu1  ;;  %v642_v40 = vadd.f32 %v641_v38, %v2795_v10  ;;  %v686_v38 = vadd.f32 %v685_v28, %v2876_v49  ;;  %v683_v28 = vadd.f32 %v682_v20, %v2864_v45  ;;  %v1070_v20 = vmax.f32 %v681_v61, 0.0 }
 0x135   :  { %v691_v53 = vadd.f32 %v690_v44, %v2795_v10 }
 0x136   :  { %2079 = vmatmul.msk.bf16.gmra.mxu0 %vm380_vm0, %v2874_v48  ;;  %v1101_v42 = vmax.f32 %v642_v40, 0.0  ;;  %v1086_v24 = vmax.f32 %v686_v38, 0.0  ;;  %v735_v38 = vadd.f32 %v734_v62, %v2876_v49 }
 0x137   :  { %2087 = vmatmul.msk.bf16.gmra.mxu1 %vm380_vm0, %v2874_v48  ;;  %v1102_v63 = vmax.f32 %v691_v53, 0.0 }
 0x138   :  { %2095 = vmatmul.msk.bf16.gmra.mxu2 %vm380_vm0, %v2874_v48 }
 0x139   :  { %2103 = vmatmul.msk.bf16.gmra.mxu3 %vm380_vm0, %v2874_v48  ;;  %v688_v48 = vadd.f32 %v687_v32, %v2896_v54  ;;  %v1093_v32 = vmax.f32 %v639_v16, 0.0  ;;  %v737_v16 = vadd.f32 %v736_v34, %v2896_v54  ;;  %v1054_v34 = vmax.f32 %v3086_v39, 0.0 }
 0x13a   :  { %v1062_v39 = vmax.f32 %v678_v12, 0.0 }
 0x13b   :  { %v739_v56 = vpop.f32.mrf.mxu2  ;;  %v643_v51 = vpop.f32.mrf.mxu0 }
 0x13c   :  { %v788_v27 = vpop.f32.mrf.mxu3  ;;  %v644_v57 = vadd.f32 %v643_v51, %v2848_v41  ;;  %v692_v4 = vpop.f32.mrf.mxu1  ;;  %v634_v51 = vadd.f32 %v633_v18, %v2864_v45  ;;  %v740_v52 = vadd.f32 %v739_v56, %v2795_v10  ;;  %v1078_v56 = vmax.f32 %v683_v28, 0.0 }
 0x13d   :  { %v693_v44 = vadd.f32 %v692_v4, %v2848_v41  ;;  %v1094_v4 = vmax.f32 %v688_v48, 0.0  ;;  %v789_v18 = vadd.f32 %v788_v27, %v2795_v10  ;;  %v1173_v27 = vpack.c.bf16 %v1093_v32, %v1085_v33 }
 0x13e   :  { %v1109_v37 = vmax.f32 %v644_v57, 0.0  ;;  %v629_v57 = vadd.f32 %v3032_v6, %v2907_v60  ;;  %v1077_v55 = vmax.f32 %v634_v51, 0.0  ;;  %v786_v6 = vadd.f32 %v785_v36, %v2896_v54 }
 0x13f   :  { %v1110_v40 = vmax.f32 %v693_v44, 0.0  ;;  %v1103_v48 = vmax.f32 %v740_v52, 0.0  ;;  %v1174_v51 = vpack.c.bf16 %v1094_v4, %v1086_v24  ;;  %v732_v36 = vadd.f32 %v3052_v22, %v2864_v45 }
 0x140   :  { %v1181_v53 = vpack.c.bf16 %v1109_v37, %v1101_v42  ;;  %v1061_v28 = vmax.f32 %v629_v57, 0.0  ;;  %v781_v33 = vadd.f32 %v3054_v25, %v2864_v45  ;;  %v1096_v62 = vmax.f32 %v786_v6, 0.0 }
 0x141   :  { %v1182_v21 = vpack.c.bf16 %v1110_v40, %v1102_v63  ;;  %v1104_v40 = vmax.f32 %v789_v18, 0.0  ;;  %v1165_v32 = vpack.c.bf16 %v1077_v55, %v1069_v13  ;;  %v1087_v4 = vmax.f32 %v735_v38, 0.0 }
 0x142   :  { %1261 = vmatpush.bf16.msra.mxu0 %v1181_v53  ;;  %v1166_v52 = vpack.c.bf16 %v1078_v56, %v1070_v20  ;;  %v779_v57 = vadd.f32 %v3050_v15, %v2837_v35  ;;  %v727_v25 = vadd.f32 %v3036_v9, %v2907_v60  ;;  %v776_v20 = vadd.f32 %v3038_v11, %v2907_v60 }
 0x143   :  { %v741_v44 = vpop.f32.mrf.mxu2  ;;  %1290 = vmatpush.bf16.msra.mxu1 %v1182_v21  ;;  %v3101_v63 = vpop.f32.mrf.mxu0  ;;  %v784_v21 = vadd.f32 %v3064_v29, %v2876_v49  ;;  %v730_v29 = vadd.f32 %v3048_v23, %v2837_v35  ;;  %v1080_v55 = vmax.f32 %v781_v33, 0.0  ;;  %v1157_v56 = vpack.c.bf16 %v1061_v28, %v1053_v26 }
 0x144   :  { %v742_v37 = vadd.f32 %v741_v44, %v2848_v41  ;;  %v790_v42 = vpop.f32.mrf.mxu3  ;;  %v3105_v50 = vpop.f32.mrf.mxu1  ;;  %v1095_v44 = vmax.f32 %v737_v16, 0.0  ;;  %v1079_v16 = vmax.f32 %v732_v36, 0.0  ;;  %v725_v9 = vadd.f32 %v3028_v1, %v2866_v46 }
 0x145   :  { %v791_v7 = vadd.f32 %v790_v42, %v2848_v41  ;;  %v1088_v22 = vmax.f32 %v784_v21, 0.0  ;;  %v1071_v6 = vmax.f32 %v730_v29, 0.0  ;;  %v1072_v38 = vmax.f32 %v779_v57, 0.0 }
 0x146   :  { %v1111_v61 = vmax.f32 %v742_v37, 0.0  ;;  %1262 = vmatpush.bf16.msra.mxu0 %v1173_v27  ;;  %v1175_v23 = vpack.c.bf16 %v1095_v44, %v1087_v4  ;;  %v774_v27 = vadd.f32 %v3030_v3, %v2866_v46  ;;  %v1063_v11 = vmax.f32 %v727_v25, 0.0  ;;  %v3214_v25 = vld [vmem:[%s3747_s3 + $0x10] sm:$0xff] }
 0x147   :  { %v1112_v53 = vmax.f32 %v791_v7, 0.0  ;;  %1291 = vmatpush.bf16.msra.mxu1 %v1174_v51  ;;  %v1176_v37 = vpack.c.bf16 %v1096_v62, %v1088_v22  ;;  %v1158_v7 = vpack.c.bf16 %v1062_v39, %v1054_v34  ;;  %v1168_v51 = vpack.c.bf16 %v1080_v55, %v1072_v38  ;;  %v3197_v62 = vld [vmem:[%s3747_s3 + $0x8] sm:$0xff]  ;;  %3815 = vst [vmem:[#allocation29_spill] sm:$0xff] %v3214_v25 }
 0x148   :  { %v1183_v42 = vpack.c.bf16 %v1111_v61, %v1103_v48  ;;  %v1167_v48 = vpack.c.bf16 %v1079_v16, %v1071_v6  ;;  %v1064_v61 = vmax.f32 %v776_v20, 0.0  ;;  %v1055_v21 = vmax.f32 %v725_v9, 0.0  ;;  %3811 = vst [vmem:[#allocation25_spill] sm:$0xff] %v3197_v62 }
 0x149   :  { %v1184_v24 = vpack.c.bf16 %v1112_v53, %v1104_v40  ;;  %v1056_v58 = vmax.f32 %v774_v27, 0.0 }
 0x14a   :  { %1319 = vmatpush.bf16.msra.mxu2 %v1183_v42  ;;  %1263 = vmatpush.bf16.msra.mxu0 %v1165_v32  ;;  %v1159_v34 = vpack.c.bf16 %v1063_v11, %v1055_v21 }
 0x14b   :  { %1348 = vmatpush.bf16.msra.mxu3 %v1184_v24  ;;  %v3119_v18 = vpop.f32.mrf.mxu2  ;;  %1292 = vmatpush.bf16.msra.mxu1 %v1166_v52  ;;  %v3125_v12 = vpop.f32.mrf.mxu0  ;;  %v1160_v53 = vpack.c.bf16 %v1064_v61, %v1056_v58 }
 0x14c   :  { %3796 = vst [vmem:[#allocation18_spill] sm:$0xff] %v3119_v18  ;;  %v3123_v13 = vpop.f32.mrf.mxu3  ;;  %v3129_v15 = vpop.f32.mrf.mxu1 }
 0x14d   :  { %3797 = vst [vmem:[#allocation19_spill] sm:$0xff] %v3123_v13 }
 0x14e   :  { %1320 = vmatpush.bf16.msra.mxu2 %v1175_v23  ;;  %1264 = vmatpush.bf16.msra.mxu0 %v1157_v56 }
 0x14f   :  { %1349 = vmatpush.bf16.msra.mxu3 %v1176_v37  ;;  %1293 = vmatpush.bf16.msra.mxu1 %v1158_v7  ;;  %v3233_v7 = vld [vmem:[%s3747_s3 + $0x18] sm:$0xff] }
 0x150   :  { %3816 = vst [vmem:[#allocation30_spill] sm:$0xff] %v3233_v7 }
 0x152   :  { %1321 = vmatpush.bf16.msra.mxu2 %v1167_v48  ;;  %1265 = vmatpush.bf16.msra.mxu0 %v3008_v30 }
 0x153   :  { %1350 = vmatpush.bf16.msra.mxu3 %v1168_v51  ;;  %v3137_v26 = vpop.f32.mrf.mxu2  ;;  %1294 = vmatpush.bf16.msra.mxu1 %v3011_v31  ;;  %v3143_v3 = vpop.f32.mrf.mxu0 }
 0x154   :  { %3798 = vst [vmem:[#allocation20_spill] sm:$0xff] %v3137_v26  ;;  %v3140_v1 = vpop.f32.mrf.mxu3  ;;  %v3145_v40 = vpop.f32.mrf.mxu1 }
 0x155   :  { %3799 = vst [vmem:[#allocation21_spill] sm:$0xff] %v3140_v1  ;;  %v3817_v1 = vld [vmem:[#allocation6_spill] sm:$0xff] }
 0x156   :  { %1322 = vmatpush.bf16.msra.mxu2 %v1159_v34  ;;  %1266 = vmatpush.bf16.msra.mxu0 %v2984_v43  ;;  %v3165_v43 = vld [vmem:[%s3747_s3] sm:$0xff] }
 0x157   :  { %1351 = vmatpush.bf16.msra.mxu3 %v1160_v53  ;;  %1295 = vmatpush.bf16.msra.mxu1 %v2987_v47  ;;  %3802 = vst [vmem:[#allocation24_spill] sm:$0xff] %v3165_v43 }
 0x15a   :  { %1323 = vmatpush.bf16.msra.mxu2 %v3022_v59  ;;  %1267 = vmatpush.bf16.msra.mxu0 %v2960_v2  ;;  %v3803_v2 = vld [vmem:[#allocation16_spill] sm:$0xff] }
 0x15b   :  { %1352 = vmatpush.bf16.msra.mxu3 %v3026_v0  ;;  %v3151_v30 = vpop.f32.mrf.mxu2  ;;  %1296 = vmatpush.bf16.msra.mxu1 %v2963_v5  ;;  %v3157_v28 = vpop.f32.mrf.mxu0  ;;  %v3804_v5 = vld [vmem:[#allocation17_spill] sm:$0xff] }
 0x15c   :  { %3800 = vst [vmem:[#allocation22_spill] sm:$0xff] %v3151_v30  ;;  %v3154_v31 = vpop.f32.mrf.mxu3  ;;  %v3159_v36 = vpop.f32.mrf.mxu1  ;;  %v3818_v30 = vld [vmem:[#allocation10_spill] sm:$0xff] }
 0x15d   :  { %3801 = vst [vmem:[#allocation23_spill] sm:$0xff] %v3154_v31 }
 0x15e   :  { %1324 = vmatpush.bf16.msra.mxu2 %v2998_v8  ;;  %1268 = vmatpush.bf16.msra.mxu0 %v2931_v17  ;;  %v3808_v17 = vld [vmem:[#allocation14_spill] sm:$0xff] }
 0x15f   :  { %1353 = vmatpush.bf16.msra.mxu3 %v3003_v14  ;;  %1297 = vmatpush.bf16.msra.mxu1 %v2934_v19  ;;  %v3807_v14 = vld [vmem:[#allocation13_spill] sm:$0xff] }
 0x161   :  { %1269 = vmatmul.bf16.vlgmr.msra.gmra.mxu0 %v3165_v43 }
 0x162   :  { %1325 = vmatpush.bf16.msra.mxu2 %v3803_v2  ;;  %1298 = vmatmul.bf16.vlgmr.msra.gmra.mxu1 %v3165_v43 }
 0x163   :  { %1354 = vmatpush.bf16.msra.mxu3 %v3804_v5  ;;  %v3173_v47 = vpop.f32.mrf.mxu2  ;;  %v3178_v59 = vpop.f32.mrf.mxu0 }
 0x164   :  { %3805 = vst [vmem:[#allocation16_spill] sm:$0xff] %v3173_v47  ;;  %v3176_v8 = vpop.f32.mrf.mxu3  ;;  %v3180_v0 = vpop.f32.mrf.mxu1  ;;  %v3271_v47 = vadd.f32 %v3105_v50, %v3818_v30 }
 0x165   :  { %3806 = vst [vmem:[#allocation17_spill] sm:$0xff] %v3176_v8  ;;  %v3267_v8 = vadd.f32 %v3101_v63, %v3818_v30  ;;  %v3830_v30 = vld [vmem:[#allocation12_spill] sm:$0xff] }
 0x166   :  { %1326 = vmatpush.bf16.msra.mxu2 %v3807_v14  ;;  %3820 = vst [vmem:[#allocation31_spill] sm:$0xff] %v3271_v47  ;;  %v3832_v47 = vld [vmem:[#allocation7_spill] sm:$0xff] }
 0x167   :  { %1355 = vmatpush.bf16.msra.mxu3 %v3808_v17  ;;  %3819 = vst [vmem:[#allocation6_spill] sm:$0xff] %v3267_v8  ;;  %v3827_v8 = vld [vmem:[#allocation15_spill] sm:$0xff] }
 0x168   :  { %v3291_v50 = vadd.f32 %v3157_v28, %v3827_v8 }
 0x169   :  { %1327 = vmatmul.bf16.vlgmr.msra.gmra.mxu2 %v3165_v43 }
 0x16a   :  { %1356 = vmatmul.bf16.vlgmr.msra.gmra.mxu3 %v3165_v43  ;;  %3828 = vst [vmem:[#allocation36_spill] sm:$0xff] %v3291_v50 }
 0x16b   :  { %v3186_v19 = vpop.f32.mrf.mxu2  ;;  %v3190_v42 = vpop.f32.mrf.mxu0 }
 0x16c   :  { %3809 = vst [vmem:[#allocation13_spill] sm:$0xff] %v3186_v19  ;;  %v3188_v44 = vpop.f32.mrf.mxu3  ;;  %v3192_v33 = vpop.f32.mrf.mxu1 }
 0x16d   :  { %3810 = vst [vmem:[#allocation14_spill] sm:$0xff] %v3188_v44  ;;  %v3821_v44 = vld [vmem:[#allocation11_spill] sm:$0xff] }
 0x16e   :  { %v3275_v19 = vadd.f32 %v3125_v12, %v3821_v44  ;;  %v3295_v12 = vadd.f32 %v3159_v36, %v3827_v8 }
 0x170   :  { %3822 = vst [vmem:[#allocation32_spill] sm:$0xff] %v3275_v19 }
 0x171   :  { %1274 = vmatmul.bf16.gmra.mxu0 %v3197_v62  ;;  %3829 = vst [vmem:[#allocation37_spill] sm:$0xff] %v3295_v12 }
 0x172   :  { %1303 = vmatmul.bf16.gmra.mxu1 %v3197_v62 }
 0x173   :  { %v3200_v24 = vpop.f32.mrf.mxu2  ;;  %v817_v39 = vpop.f32.mrf.mxu0 }
 0x174   :  { %3812 = vst [vmem:[#allocation26_spill] sm:$0xff] %v3200_v24  ;;  %v3203_v32 = vpop.f32.mrf.mxu3  ;;  %v866_v29 = vpop.f32.mrf.mxu1  ;;  %v3260_v26 = vadd.f32 %v817_v39, %v3817_v1  ;;  %v3824_v39 = vld [vmem:[#allocation9_spill] sm:$0xff] }
 0x175   :  { %3813 = vst [vmem:[#allocation27_spill] sm:$0xff] %v3203_v32  ;;  %v3263_v31 = vadd.f32 %v866_v29, %v3817_v1  ;;  %v3279_v32 = vadd.f32 %v3129_v15, %v3821_v44  ;;  %v3283_v29 = vadd.f32 %v3143_v3, %v3824_v39  ;;  %v3287_v63 = vadd.f32 %v3145_v40, %v3824_v39  ;;  %v3831_v44 = vld [vmem:[#allocation8_spill] sm:$0xff] }
 0x176   :  { %v3299_v15 = vadd.f32 %v3178_v59, %v3830_v30  ;;  %v3303_v3 = vadd.f32 %v3180_v0, %v3830_v30  ;;  %v3307_v40 = vadd.f32 %v3190_v42, %v3831_v44 }
 0x177   :  { %3823 = vst [vmem:[#allocation33_spill] sm:$0xff] %v3279_v32  ;;  %v3312_v32 = vadd.f32 %v3192_v33, %v3831_v44 }
 0x178   :  { %3825 = vst [vmem:[#allocation34_spill] sm:$0xff] %v3283_v29 }
 0x179   :  { %1332 = vmatmul.bf16.gmra.mxu2 %v3197_v62  ;;  %3826 = vst [vmem:[#allocation35_spill] sm:$0xff] %v3287_v63 }
 0x17a   :  { %1361 = vmatmul.bf16.gmra.mxu3 %v3197_v62 }
 0x17b   :  { %v3207_v4 = vpop.f32.mrf.mxu2  ;;  %v819_v57 = vpop.f32.mrf.mxu0 }
 0x17c   :  { %v3209_v52 = vpop.f32.mrf.mxu3  ;;  %v868_v22 = vpop.f32.mrf.mxu1  ;;  %v3318_v30 = vadd.f32 %v819_v57, %v3832_v47 }
 0x17d   :  { %3814 = vst [vmem:[#allocation28_spill] sm:$0xff] %v3209_v52  ;;  %v3321_v42 = vadd.f32 %v868_v22, %v3832_v47 }
 0x181   :  { %1279 = vmatmul.bf16.gmra.mxu0 %v3214_v25 }
 0x182   :  { %1308 = vmatmul.bf16.gmra.mxu1 %v3214_v25 }
 0x183   :  { %v3217_v16 = vpop.f32.mrf.mxu2  ;;  %v822_v20 = vpop.f32.mrf.mxu0 }
 0x184   :  { %v3220_v23 = vpop.f32.mrf.mxu3  ;;  %v871_v55 = vpop.f32.mrf.mxu1  ;;  %v3326_v24 = vadd.f32 %v822_v20, %v2866_v46 }
 0x185   :  { %v3334_v57 = vadd.f32 %v871_v55, %v2866_v46 }
 0x189   :  { %1337 = vmatmul.bf16.gmra.mxu2 %v3214_v25 }
 0x18a   :  { %1366 = vmatmul.bf16.gmra.mxu3 %v3214_v25 }
 0x18b   :  { %v3224_v37 = vpop.f32.mrf.mxu2  ;;  %v824_v9 = vpop.f32.mrf.mxu0 }
 0x18c   :  { %v3226_v56 = vpop.f32.mrf.mxu3  ;;  %v3228_v6 = vpop.f32.mrf.mxu1  ;;  %v3329_v59 = vadd.f32 %v824_v9, %v2907_v60 }
 0x18d   :  { %v3341_v9 = vadd.f32 %v3228_v6, %v2907_v60 }
 0x18e   :  { %v1065_v55 = vmax.f32 %v3329_v59, 0.0 }
 0x191   :  { %1284 = vmatmul.bf16.gmra.mxu0 %v3233_v7 }
 0x192   :  { %1313 = vmatmul.bf16.gmra.mxu1 %v3233_v7 }
 0x193   :  { %v3236_v27 = vpop.f32.mrf.mxu2  ;;  %v3241_v11 = vpop.f32.mrf.mxu0 }
 0x194   :  { %v3239_v38 = vpop.f32.mrf.mxu3  ;;  %v3243_v48 = vpop.f32.mrf.mxu1 }
 0x199   :  { %1342 = vmatmul.bf16.gmra.mxu2 %v3233_v7 }
 0x19a   :  { %1371 = vmatmul.bf16.gmra.mxu3 %v3233_v7 }
 0x19b   :  { %v3247_v61 = vpop.f32.mrf.mxu2  ;;  %v829_v21 = vpop.f32.mrf.mxu0 }
 0x19c   :  { %v3249_v51 = vpop.f32.mrf.mxu3  ;;  %v878_v58 = vpop.f32.mrf.mxu1 }
 0x1a3   :  { %v3251_v34 = vpop.f32.mrf.mxu2  ;;  %v832_v2 = vpop.f32.mrf.mxu0 }
 0x1a4   :  { %v3253_v53 = vpop.f32.mrf.mxu3  ;;  %v881_v5 = vpop.f32.mrf.mxu1  ;;  %v833_v22 = vadd.f32 %v832_v2, %v2876_v49 }
 0x1a5   :  { %v882_v50 = vadd.f32 %v881_v5, %v2876_v49 }
 0x1a6   :  { %v1089_v5 = vmax.f32 %v833_v22, 0.0 }
 0x1ab   :  { %v3255_v14 = vpop.f32.mrf.mxu2  ;;  %v834_v25 = vpop.f32.mrf.mxu0 }
 0x1ac   :  { %v3257_v17 = vpop.f32.mrf.mxu3  ;;  %v883_v62 = vpop.f32.mrf.mxu1 }
 0x1b3   :  { %v932_v43 = vpop.f32.mrf.mxu2  ;;  %v837_v13 = vpop.f32.mrf.mxu0 }
 0x1b4   :  { %v981_v7 = vpop.f32.mrf.mxu3  ;;  %v886_v18 = vpop.f32.mrf.mxu1  ;;  %v838_v39 = vadd.f32 %v837_v13, %v2795_v10  ;;  %v835_v13 = vadd.f32 %v834_v25, %v2896_v54 }
 0x1b5   :  { %v887_v8 = vadd.f32 %v886_v18, %v2795_v10  ;;  %v884_v18 = vadd.f32 %v883_v62, %v2896_v54  ;;  %v879_v62 = vadd.f32 %v878_v58, %v2864_v45 }
 0x1b6   :  { %v1105_v44 = vmax.f32 %v838_v39, 0.0 }
 0x1b7   :  { %v1106_v20 = vmax.f32 %v887_v8, 0.0  ;;  %v1098_v29 = vmax.f32 %v884_v18, 0.0  ;;  %v877_v8 = vadd.f32 %v3243_v48, %v2837_v35  ;;  %v931_v48 = vadd.f32 %v3255_v14, %v2876_v49 }
 0x1b8   :  { %v977_v14 = vadd.f32 %v3253_v53, %v2864_v45  ;;  %v923_v53 = vadd.f32 %v3236_v27, %v2907_v60  ;;  %v1026_v27 = vmax.f32 %v3303_v3, 0.0  ;;  %v3833_v3 = vmax.f32 %v3260_v26, 0.0  ;;  %v3838_v26 = vld [vmem:[#allocation36_spill] sm:$0xff] }
 0x1bb   :  { %v935_v28 = vpop.f32.mrf.mxu2  ;;  %v839_v0 = vpop.f32.mrf.mxu0 }
 0x1bc   :  { %v984_v19 = vpop.f32.mrf.mxu3  ;;  %v840_v12 = vadd.f32 %v839_v0, %v2848_v41  ;;  %v888_v33 = vpop.f32.mrf.mxu1  ;;  %v830_v0 = vadd.f32 %v829_v21, %v2864_v45  ;;  %v936_v2 = vadd.f32 %v935_v28, %v2795_v10  ;;  %v828_v21 = vadd.f32 %v3241_v11, %v2837_v35 }
 0x1bd   :  { %v889_v36 = vadd.f32 %v888_v33, %v2848_v41  ;;  %v1097_v33 = vmax.f32 %v835_v13, 0.0  ;;  %v985_v6 = vadd.f32 %v984_v19, %v2795_v10  ;;  %v982_v28 = vadd.f32 %v981_v7, %v2896_v54 }
 0x1be   :  { %v1113_v25 = vmax.f32 %v840_v12, 0.0  ;;  %v1081_v58 = vmax.f32 %v830_v0, 0.0  ;;  %v1107_v10 = vmax.f32 %v936_v2, 0.0  ;;  %v1073_v22 = vmax.f32 %v828_v21, 0.0 }
 0x1bf   :  { %v1114_v52 = vmax.f32 %v889_v36, 0.0  ;;  %v1090_v36 = vmax.f32 %v882_v50, 0.0  ;;  %v1177_v18 = vpack.c.bf16 %v1097_v33, %v1089_v5  ;;  %v1108_v50 = vmax.f32 %v985_v6, 0.0 }
 0x1c0   :  { %v1185_v63 = vpack.c.bf16 %v1113_v25, %v1105_v44  ;;  %v933_v44 = vadd.f32 %v932_v43, %v2896_v54  ;;  %v980_v43 = vadd.f32 %v3257_v17, %v2876_v49  ;;  %v1074_v0 = vmax.f32 %v877_v8, 0.0 }
 0x1c1   :  { %v1186_v39 = vpack.c.bf16 %v1114_v52, %v1106_v20  ;;  %v1082_v52 = vmax.f32 %v879_v62, 0.0  ;;  %v928_v54 = vadd.f32 %v3251_v34, %v2864_v45  ;;  %v1100_v20 = vmax.f32 %v982_v28, 0.0  ;;  %v3835_v28 = vld [vmem:[#allocation34_spill] sm:$0xff] }
 0x1c2   :  { %1377 = vmatpush.bf16.msrb.mxu0 %v1185_v63  ;;  %v1178_v63 = vpack.c.bf16 %v1098_v29, %v1090_v36  ;;  %v1099_v7 = vmax.f32 %v933_v44, 0.0  ;;  %v1169_v29 = vpack.c.bf16 %v1081_v58, %v1073_v22  ;;  %v1066_v33 = vmax.f32 %v3341_v9, 0.0 }
 0x1c3   :  { %v937_v12 = vpop.f32.mrf.mxu2  ;;  %1406 = vmatpush.bf16.msrb.mxu1 %v1186_v39  ;;  %v926_v49 = vadd.f32 %v3247_v61, %v2837_v35  ;;  %v1091_v17 = vmax.f32 %v931_v48, 0.0  ;;  %v1170_v2 = vpack.c.bf16 %v1082_v52, %v1074_v0  ;;  %v1049_v39 = vmax.f32 %v3318_v30, 0.0 }
 0x1c4   :  { %v938_v59 = vadd.f32 %v937_v12, %v2848_v41  ;;  %v986_v13 = vpop.f32.mrf.mxu3  ;;  %v1057_v34 = vmax.f32 %v3326_v24, 0.0  ;;  %v975_v21 = vadd.f32 %v3249_v51, %v2837_v35  ;;  %v1092_v8 = vmax.f32 %v980_v43, 0.0 }
 0x1c5   :  { %v987_v11 = vadd.f32 %v986_v13, %v2848_v41  ;;  %v1058_v45 = vmax.f32 %v3334_v57, 0.0  ;;  %v1083_v9 = vmax.f32 %v928_v54, 0.0  ;;  %v1179_v61 = vpack.c.bf16 %v1099_v7, %v1091_v17  ;;  %v3842_v7 = vld [vmem:[#allocation37_spill] sm:$0xff]  ;;  %v3846_v17 = vld [vmem:[#allocation31_spill] sm:$0xff] }
 0x1c6   :  { %v1115_v19 = vmax.f32 %v938_v59, 0.0  ;;  %1378 = vmatpush.bf16.msrb.mxu0 %v1177_v18  ;;  %v972_v5 = vadd.f32 %v3239_v38, %v2907_v60  ;;  %v1084_v30 = vmax.f32 %v977_v14, 0.0  ;;  %v1180_v6 = vpack.c.bf16 %v1100_v20, %v1092_v8  ;;  %v3836_v18 = vld [vmem:[#allocation35_spill] sm:$0xff]  ;;  %v3844_v14 = vld [vmem:[#allocation13_spill] sm:$0xff]  ;;  %v3848_v8 = vld [vmem:[#allocation32_spill] sm:$0xff] }
 0x1c7   :  { %v1116_v25 = vmax.f32 %v987_v11, 0.0  ;;  %1407 = vmatpush.bf16.msrb.mxu1 %v1178_v63  ;;  %v1161_v24 = vpack.c.bf16 %v1065_v55, %v1057_v34  ;;  %v1050_v12 = vmax.f32 %v3321_v42, 0.0  ;;  %v921_v35 = vadd.f32 %v3224_v37, %v2866_v46  ;;  %v3840_v63 = vld [vmem:[#allocation26_spill] sm:$0xff] }
 0x1c8   :  { %v1187_v41 = vpack.c.bf16 %v1115_v19, %v1107_v10  ;;  %v1075_v51 = vmax.f32 %v926_v49, 0.0  ;;  %v1162_v57 = vpack.c.bf16 %v1066_v33, %v1058_v45  ;;  %v1025_v58 = vmax.f32 %v3299_v15, 0.0  ;;  %v3839_v19 = vld [vmem:[#allocation8_spill] sm:$0xff]  ;;  %v3845_v33 = vld [vmem:[#allocation6_spill] sm:$0xff] }
 0x1c9   :  { %v1188_v62 = vpack.c.bf16 %v1116_v25, %v1108_v50  ;;  %v970_v36 = vadd.f32 %v3226_v56, %v2866_v46  ;;  %v1076_v44 = vmax.f32 %v975_v21, 0.0  ;;  %v1033_v60 = vmax.f32 %v3307_v40, 0.0 }
 0x1ca   :  { %1435 = vmatpush.bf16.msrb.mxu2 %v1187_v41  ;;  %1379 = vmatpush.bf16.msrb.mxu0 %v1169_v29  ;;  %v918_v38 = vadd.f32 %v3217_v16, %v3832_v47  ;;  %v1067_v42 = vmax.f32 %v923_v53, 0.0  ;;  %v1171_v37 = vpack.c.bf16 %v1083_v9, %v1075_v51  ;;  %v967_v55 = vadd.f32 %v3220_v23, %v3832_v47  ;;  %v3837_v47 = vld [vmem:[#allocation28_spill] sm:$0xff]  ;;  %v3849_v53 = vld [vmem:[#allocation15_spill] sm:$0xff] }
 0x1cb   :  { %1464 = vmatpush.bf16.msrb.mxu3 %v1188_v62  ;;  %1408 = vmatpush.bf16.msrb.mxu1 %v1170_v2  ;;  %v1068_v15 = vmax.f32 %v972_v5, 0.0  ;;  %v1172_v59 = vpack.c.bf16 %v1084_v30, %v1076_v44  ;;  %v1153_v13 = vpack.c.bf16 %v1049_v39, %v3833_v3  ;;  %v1034_v46 = vmax.f32 %v3312_v32, 0.0  ;;  %v3847_v39 = vld [vmem:[#allocation14_spill] sm:$0xff]  ;;  %v3850_v9 = vld [vmem:[#allocation16_spill] sm:$0xff] }
 0x1cc   :  { %v916_v56 = vadd.f32 %v3207_v4, %v3817_v1  ;;  %v1059_v40 = vmax.f32 %v921_v35, 0.0  ;;  %v3834_v16 = vmax.f32 %v3263_v31, 0.0  ;;  %v1009_v11 = vmax.f32 %v3835_v28, 0.0  ;;  %v3841_v31 = vld [vmem:[#allocation27_spill] sm:$0xff] }
 0x1cd   :  { %v1010_v48 = vmax.f32 %v3836_v18, 0.0  ;;  %v965_v23 = vadd.f32 %v3837_v47, %v3817_v1  ;;  %v1060_v10 = vmax.f32 %v970_v36, 0.0  ;;  %v1017_v32 = vmax.f32 %v3838_v26, 0.0  ;;  %v3843_v1 = vld [vmem:[#allocation12_spill] sm:$0xff]  ;;  %v3854_v36 = vld [vmem:[#allocation22_spill] sm:$0xff] }
 0x1ce   :  { %1436 = vmatpush.bf16.msrb.mxu2 %v1179_v61  ;;  %1380 = vmatpush.bf16.msrb.mxu0 %v1161_v24  ;;  %v1154_v52 = vpack.c.bf16 %v1050_v12, %v3834_v16  ;;  %v913_v4 = vadd.f32 %v3840_v63, %v3839_v19  ;;  %v1051_v22 = vmax.f32 %v918_v38, 0.0  ;;  %v1163_v43 = vpack.c.bf16 %v1067_v42, %v1059_v40  ;;  %v3855_v42 = vld [vmem:[#allocation23_spill] sm:$0xff]  ;;  %v3860_v18 = vld [vmem:[#allocation18_spill] sm:$0xff] }
 0x1cf   :  { %1465 = vmatpush.bf16.msrb.mxu3 %v1180_v6  ;;  %1409 = vmatpush.bf16.msrb.mxu1 %v1162_v57  ;;  %v962_v50 = vadd.f32 %v3841_v31, %v3839_v19  ;;  %v1052_v25 = vmax.f32 %v967_v55, 0.0  ;;  %v1164_v0 = vpack.c.bf16 %v1068_v15, %v1060_v10  ;;  %v1145_v54 = vpack.c.bf16 %v1033_v60, %v1025_v58  ;;  %v3851_v6 = vld [vmem:[#allocation17_spill] sm:$0xff]  ;;  %v3856_v15 = vld [vmem:[#allocation11_spill] sm:$0xff] }
 0x1d0   :  { %v1018_v41 = vmax.f32 %v3842_v7, 0.0  ;;  %v911_v20 = vadd.f32 %v3844_v14, %v3843_v1  ;;  %v1043_v62 = vmax.f32 %v916_v56, 0.0  ;;  %v1146_v29 = vpack.c.bf16 %v1034_v46, %v1026_v27  ;;  %v3852_v57 = vld [vmem:[#allocation33_spill] sm:$0xff]  ;;  %v3861_v10 = vld [vmem:[#allocation19_spill] sm:$0xff] }
 0x1d1   :  { %v993_v49 = vmax.f32 %v3845_v33, 0.0  ;;  %v994_v2 = vmax.f32 %v3846_v17, 0.0  ;;  %v960_v34 = vadd.f32 %v3847_v39, %v3843_v1  ;;  %v1044_v21 = vmax.f32 %v965_v23, 0.0  ;;  %v3853_v27 = vld [vmem:[#allocation9_spill] sm:$0xff] }
 0x1d2   :  { %1437 = vmatpush.bf16.msrb.mxu2 %v1171_v37  ;;  %1381 = vmatpush.bf16.msrb.mxu0 %v1153_v13  ;;  %v1001_v45 = vmax.f32 %v3848_v8, 0.0  ;;  %v908_v61 = vadd.f32 %v3850_v9, %v3849_v53  ;;  %v1035_v5 = vmax.f32 %v913_v4, 0.0  ;;  %v1155_v30 = vpack.c.bf16 %v1051_v22, %v1043_v62  ;;  %v3858_v56 = vld [vmem:[#allocation21_spill] sm:$0xff] }
 0x1d3   :  { %1466 = vmatpush.bf16.msrb.mxu3 %v1172_v59  ;;  %1410 = vmatpush.bf16.msrb.mxu1 %v1154_v52  ;;  %v957_v24 = vadd.f32 %v3851_v6, %v3849_v53  ;;  %v1036_v12 = vmax.f32 %v962_v50, 0.0  ;;  %v1156_v35 = vpack.c.bf16 %v1052_v25, %v1044_v21  ;;  %v1137_v51 = vpack.c.bf16 %v1017_v32, %v1009_v11  ;;  %v3857_v59 = vld [vmem:[#allocation20_spill] sm:$0xff]  ;;  %v3859_v11 = vld [vmem:[#allocation10_spill] sm:$0xff]  ;;  %v3863_v33 = vld [vmem:[#allocation25_spill] sm:$0xff]  ;;  %v3466_v6 = vpop.permute.xlu2 %1234 }
 0x1d4   :  { %v1002_v58 = vmax.f32 %v3852_v57, 0.0  ;;  %v906_v44 = vadd.f32 %v3854_v36, %v3853_v27  ;;  %v1027_v60 = vmax.f32 %v911_v20, 0.0  ;;  %v1138_v38 = vpack.c.bf16 %v1018_v41, %v1010_v48  ;;  %v3862_v25 = vld [vmem:[#allocation24_spill] sm:$0xff]  ;;  %v3864_v53 = vld [vmem:[#allocation29_spill] sm:$0xff] }
 0x1d5   :  { %v955_v37 = vadd.f32 %v3855_v42, %v3853_v27  ;;  %v1028_v55 = vmax.f32 %v960_v34, 0.0  ;;  %v903_v3 = vadd.f32 %v3857_v59, %v3856_v15  ;;  %v1019_v13 = vmax.f32 %v908_v61, 0.0  ;;  %v3865_v27 = vld [vmem:[#allocation30_spill] sm:$0xff] }
 0x1d6   :  { %1438 = vmatpush.bf16.msrb.mxu2 %v1163_v43  ;;  %1382 = vmatpush.bf16.msrb.mxu0 %v1145_v54  ;;  %v1147_v46 = vpack.c.bf16 %v1035_v5, %v1027_v60  ;;  %v952_v40 = vadd.f32 %v3858_v56, %v3856_v15  ;;  %v1020_v16 = vmax.f32 %v957_v24, 0.0  ;;  %v1129_v28 = vpack.c.bf16 %v1001_v45, %v993_v49 }
 0x1d7   :  { %1467 = vmatpush.bf16.msrb.mxu3 %v1164_v0  ;;  %1411 = vmatpush.bf16.msrb.mxu1 %v1146_v29  ;;  %v1148_v52 = vpack.c.bf16 %v1036_v12, %v1028_v55  ;;  %v901_v48 = vadd.f32 %v3860_v18, %v3859_v11  ;;  %v1011_v47 = vmax.f32 %v906_v44, 0.0  ;;  %v1130_v23 = vpack.c.bf16 %v1002_v58, %v994_v2  ;;  %v3470_v12 = vpop.permute.xlu1 %1229  ;;  %v3474_v58 = vpop.permute.xlu0 %1219 }
 0x1d8   :  { %v950_v26 = vadd.f32 %v3861_v10, %v3859_v11  ;;  %v1012_v32 = vmax.f32 %v955_v37, 0.0  ;;  %v1003_v63 = vmax.f32 %v903_v3, 0.0  ;;  %v1004_v43 = vmax.f32 %v952_v40, 0.0 }
 0x1d9   :  { %v1139_v22 = vpack.c.bf16 %v1019_v13, %v1011_v47  ;;  %v995_v50 = vmax.f32 %v901_v48, 0.0 }
 0x1da   :  { %1439 = vmatpush.bf16.msrb.mxu2 %v1155_v30  ;;  %1383 = vmatpush.bf16.msrb.mxu0 %v1137_v51  ;;  %v1140_v31 = vpack.c.bf16 %v1020_v16, %v1012_v32  ;;  %v996_v0 = vmax.f32 %v950_v26, 0.0 }
 0x1db   :  { %1468 = vmatpush.bf16.msrb.mxu3 %v1156_v35  ;;  %1412 = vmatpush.bf16.msrb.mxu1 %v1138_v38  ;;  %v1131_v54 = vpack.c.bf16 %v1003_v63, %v995_v50  ;;  %v3478_v44 = vpop.permute.xlu2 %1209 }
 0x1dc   :  { %v1132_v7 = vpack.c.bf16 %v1004_v43, %v996_v0 }
 0x1de   :  { %1440 = vmatpush.bf16.msrb.mxu2 %v1147_v46  ;;  %v3428_v19 = vpop.f32.mrf.mxu0  ;;  %1384 = vmatpush.bf16.msrb.mxu0 %v1129_v28 }
 0x1df   :  { %1469 = vmatpush.bf16.msrb.mxu3 %v1148_v52  ;;  %v3430_v4 = vpop.f32.mrf.mxu1  ;;  %1413 = vmatpush.bf16.msrb.mxu1 %v1130_v23  ;;  %v3481_v42 = vpop.permute.xlu1 %1224 }
 0x1e0   :  { %v3491_v52 = vpop.permute.xlu0 %1214 }
 0x1e1   :  { %1385 = vmatmul.bf16.vlgmr.msrb.gmra.mxu0 %v3862_v25 }
 0x1e2   :  { %1441 = vmatpush.bf16.msrb.mxu2 %v1139_v22  ;;  %1414 = vmatmul.bf16.vlgmr.msrb.gmra.mxu1 %v3862_v25 }
 0x1e3   :  { %1470 = vmatpush.bf16.msrb.mxu3 %v1140_v31  ;;  %v3497_v50 = vpop.permute.xlu2 %1204 }
 0x1e6   :  { %1442 = vmatpush.bf16.msrb.mxu2 %v1131_v54  ;;  %v3434_v41 = vpop.f32.mrf.mxu0 }
 0x1e7   :  { %1471 = vmatpush.bf16.msrb.mxu3 %v1132_v7  ;;  %v3436_v1 = vpop.f32.mrf.mxu1  ;;  %v1273_v54 = vadd.f32 %v3434_v41, %v3497_v50 }
 0x1e9   :  { %1443 = vmatmul.bf16.vlgmr.msrb.gmra.mxu2 %v3862_v25 }
 0x1ea   :  { %1472 = vmatmul.bf16.vlgmr.msrb.gmra.mxu3 %v3862_v25 }
 0x1ec   :  { %v3440_v14 = vpop.f32.mrf.mxu2 }
 0x1ed   :  { %v3442_v20 = vpop.f32.mrf.mxu3 }
 0x1ee   :  { %v1275_v62 = vpop.f32.mrf.mxu0 }
 0x1ef   :  { %v3444_v29 = vpop.f32.mrf.mxu1  ;;  %v1276_v43 = vadd.f32 %v1275_v62, %v3478_v44 }
 0x1f0   :  { %v1305_v25 = vadd.f32 %v3444_v29, %v3478_v44 }
 0x1f1   :  { %1390 = vmatmul.bf16.gmra.mxu0 %v3863_v33 }
 0x1f2   :  { %1419 = vmatmul.bf16.gmra.mxu1 %v3863_v33 }
 0x1f4   :  { %v3448_v49 = vpop.f32.mrf.mxu2 }
 0x1f5   :  { %v3450_v17 = vpop.f32.mrf.mxu3 }
 0x1f6   :  { %v1277_v2 = vpop.f32.mrf.mxu0 }
 0x1f7   :  { %v1306_v39 = vpop.f32.mrf.mxu1  ;;  %v1278_v48 = vadd.f32 %v1277_v2, %v3491_v52  ;;  %v3503_v2 = vpop.permute.xlu1 %1199 }
 0x1f8   :  { %v1307_v26 = vadd.f32 %v1306_v39, %v3491_v52  ;;  %v1302_v39 = vadd.f32 %v3436_v1, %v3497_v50  ;;  %v1300_v29 = vadd.f32 %v3430_v4, %v3503_v2 }
 0x1f9   :  { %1448 = vmatmul.bf16.gmra.mxu2 %v3863_v33  ;;  %v1517_v7 = vmax.f32 %v1278_v48, 0.0 }
 0x1fa   :  { %1477 = vmatmul.bf16.gmra.mxu3 %v3863_v33  ;;  %v1518_v62 = vmax.f32 %v1307_v26, 0.0  ;;  %v1502_v1 = vmax.f32 %v1302_v39, 0.0 }
 0x1fc   :  { %v3454_v34 = vpop.f32.mrf.mxu2 }
 0x1fd   :  { %v3456_v21 = vpop.f32.mrf.mxu3 }
 0x1fe   :  { %v1280_v8 = vpop.f32.mrf.mxu0 }
 0x1ff   :  { %v1309_v45 = vpop.f32.mrf.mxu1  ;;  %v1281_v56 = vadd.f32 %v1280_v8, %v3474_v58 }
 0x200   :  { %v1310_v28 = vadd.f32 %v1309_v45, %v3474_v58  ;;  %v1271_v45 = vadd.f32 %v3428_v19, %v3503_v2 }
 0x201   :  { %1395 = vmatmul.bf16.gmra.mxu0 %v3864_v53  ;;  %v1525_v31 = vmax.f32 %v1281_v56, 0.0 }
 0x202   :  { %1424 = vmatmul.bf16.gmra.mxu1 %v3864_v53  ;;  %v1526_v0 = vmax.f32 %v1310_v28, 0.0 }
 0x204   :  { %v3460_v9 = vpop.f32.mrf.mxu2 }
 0x205   :  { %v3462_v61 = vpop.f32.mrf.mxu3 }
 0x206   :  { %v1282_v5 = vpop.f32.mrf.mxu0 }
 0x207   :  { %v1311_v30 = vpop.f32.mrf.mxu1  ;;  %v1283_v15 = vadd.f32 %v1282_v5, %v3481_v42  ;;  %v1510_v5 = vmax.f32 %v1305_v25, 0.0 }
 0x208   :  { %v1312_v13 = vadd.f32 %v1311_v30, %v3481_v42  ;;  %v1501_v30 = vmax.f32 %v1273_v54, 0.0 }
 0x209   :  { %1453 = vmatmul.bf16.gmra.mxu2 %v3864_v53  ;;  %v1533_v47 = vmax.f32 %v1283_v15, 0.0  ;;  %v1493_v15 = vmax.f32 %v1271_v45, 0.0 }
 0x20a   :  { %1482 = vmatmul.bf16.gmra.mxu3 %v3864_v53  ;;  %v1534_v32 = vmax.f32 %v1312_v13, 0.0  ;;  %v1509_v53 = vmax.f32 %v1276_v43, 0.0  ;;  %v1360_v43 = vadd.f32 %v3450_v17, %v3497_v50 }
 0x20b   :  { %v1577_v33 = vpack.c.bf16 %v1533_v47, %v1525_v31  ;;  %v3526_v47 = vld [vmem:[%s3749_s5] sm:$0xff] }
 0x20c   :  { %v3468_v24 = vpop.f32.mrf.mxu2  ;;  %v1578_v8 = vpack.c.bf16 %v1534_v32, %v1526_v0 }
 0x20d   :  { %v3472_v35 = vpop.f32.mrf.mxu3  ;;  %v1339_v13 = vadd.f32 %v3468_v24, %v3474_v58  ;;  %v1365_v24 = vadd.f32 %v3462_v61, %v3491_v52 }
 0x20e   :  { %v1285_v51 = vpop.f32.mrf.mxu0 }
 0x20f   :  { %v1314_v57 = vpop.f32.mrf.mxu1  ;;  %v1286_v38 = vadd.f32 %v1285_v51, %v3470_v12  ;;  %v1569_v51 = vpack.c.bf16 %v1517_v7, %v1509_v53  ;;  %v1527_v26 = vmax.f32 %v1339_v13, 0.0 }
 0x210   :  { %v1315_v37 = vadd.f32 %v1314_v57, %v3470_v12 }
 0x211   :  { %1400 = vmatmul.bf16.gmra.mxu0 %v3865_v27  ;;  %v1541_v40 = vmax.f32 %v1286_v38, 0.0  ;;  %v1570_v38 = vpack.c.bf16 %v1518_v62, %v1510_v5 }
 0x212   :  { %1429 = vmatmul.bf16.gmra.mxu1 %v3865_v27  ;;  %v1542_v11 = vmax.f32 %v1315_v37, 0.0 }
 0x214   :  { %v1340_v36 = vpop.f32.mrf.mxu2 }
 0x215   :  { %v1369_v60 = vpop.f32.mrf.mxu3  ;;  %v1341_v37 = vadd.f32 %v1340_v36, %v3481_v42  ;;  %v1368_v36 = vadd.f32 %v3472_v35, %v3474_v58  ;;  %v1334_v35 = vadd.f32 %v3454_v34, %v3478_v44  ;;  %v1520_v34 = vmax.f32 %v1365_v24, 0.0 }
 0x216   :  { %v1287_v55 = vpop.f32.mrf.mxu0 }
 0x217   :  { %v1288_v59 = vadd.f32 %v1287_v55, %v3466_v6  ;;  %v1316_v3 = vpop.f32.mrf.mxu1  ;;  %v1528_v32 = vmax.f32 %v1368_v36, 0.0  ;;  %v1511_v25 = vmax.f32 %v1334_v35, 0.0 }
 0x218   :  { %v1317_v46 = vadd.f32 %v1316_v3, %v3466_v6  ;;  %v1494_v3 = vmax.f32 %v1300_v29, 0.0 }
 0x219   :  { %1458 = vmatmul.bf16.gmra.mxu2 %v3865_v27  ;;  %v1549_v16 = vmax.f32 %v1288_v59, 0.0  ;;  %v1370_v59 = vadd.f32 %v1369_v60, %v3481_v42  ;;  %v1336_v60 = vadd.f32 %v3460_v9, %v3491_v52  ;;  %v1363_v9 = vadd.f32 %v3456_v21, %v3478_v44 }
 0x21a   :  { %1487 = vmatmul.bf16.gmra.mxu3 %v3865_v27  ;;  %v1550_v18 = vmax.f32 %v1317_v46, 0.0  ;;  %v1329_v21 = vadd.f32 %v3440_v14, %v3503_v2  ;;  %v3549_v14 = vld [vmem:[%s3749_s5 + $0x8] sm:$0xff]  ;;  %s2190_s5 = smov [#allocation3]  }
 0x21b   :  { %v1585_v23 = vpack.c.bf16 %v1549_v16, %v1541_v40  ;;  %v1561_v40 = vpack.c.bf16 %v1501_v30, %v1493_v15  ;;  %v1512_v0 = vmax.f32 %v1363_v9, 0.0  ;;  %s1997_s14 = sshll.u32 %s2190_s5, 4  ;;  %s1998_s14 = int_to_ptr.vmem [resolvable:$true] %s1997_s14 }
 0x21c   :  { %v1343_v10 = vpop.f32.mrf.mxu2  ;;  %v1586_v63 = vpack.c.bf16 %v1550_v18, %v1542_v11  ;;  %v1562_v11 = vpack.c.bf16 %v1502_v1, %v1494_v3  ;;  %v1535_v18 = vmax.f32 %v1341_v37, 0.0  ;;  %v1495_v17 = vmax.f32 %v1329_v21, 0.0 }
 0x21d   :  { %v1372_v22 = vpop.f32.mrf.mxu3  ;;  %1638 = vmatpush.bf16.msra.mxu0 %v1585_v23  ;;  %v1344_v41 = vadd.f32 %v1343_v10, %v3470_v12  ;;  %v1536_v23 = vmax.f32 %v1370_v59, 0.0  ;;  %v1572_v39 = vpack.c.bf16 %v1520_v34, %v1512_v0 }
 0x21e   :  { %1657 = vmatpush.bf16.msra.mxu1 %v1586_v63  ;;  %v1373_v57 = vadd.f32 %v1372_v22, %v3470_v12  ;;  %v1331_v63 = vadd.f32 %v3448_v49, %v3497_v50  ;;  %v1519_v22 = vmax.f32 %v1336_v60, 0.0  ;;  %v1579_v61 = vpack.c.bf16 %v1535_v18, %v1527_v26 }
 0x21f   :  { %v1543_v46 = vmax.f32 %v1344_v41, 0.0  ;;  %v1580_v31 = vpack.c.bf16 %v1536_v23, %v1528_v32  ;;  %v1358_v49 = vadd.f32 %v3442_v20, %v3503_v2 }
 0x220   :  { %v1544_v16 = vmax.f32 %v1373_v57, 0.0  ;;  %v1503_v54 = vmax.f32 %v1331_v63, 0.0  ;;  %v1571_v7 = vpack.c.bf16 %v1519_v22, %v1511_v25 }
 0x221   :  { %1639 = vmatpush.bf16.msra.mxu0 %v1577_v33  ;;  %v1504_v33 = vmax.f32 %v1360_v43, 0.0  ;;  %v1496_v62 = vmax.f32 %v1358_v49, 0.0 }
 0x222   :  { %1658 = vmatpush.bf16.msra.mxu1 %v1578_v8  ;;  %v1563_v8 = vpack.c.bf16 %v1503_v54, %v1495_v17 }
 0x223   :  { %v1564_v45 = vpack.c.bf16 %v1504_v33, %v1496_v62 }
 0x224   :  { %v1345_v27 = vpop.f32.mrf.mxu2 }
 0x225   :  { %v1346_v19 = vadd.f32 %v1345_v27, %v3466_v6  ;;  %v1374_v55 = vpop.f32.mrf.mxu3  ;;  %1640 = vmatpush.bf16.msra.mxu0 %v1569_v51 }
 0x226   :  { %v1375_v4 = vadd.f32 %v1374_v55, %v3466_v6  ;;  %1659 = vmatpush.bf16.msra.mxu1 %v1570_v38 }
 0x227   :  { %v1551_v56 = vmax.f32 %v1346_v19, 0.0 }
 0x228   :  { %v1552_v28 = vmax.f32 %v1375_v4, 0.0 }
 0x229   :  { %v1587_v48 = vpack.c.bf16 %v1551_v56, %v1543_v46  ;;  %1641 = vmatpush.bf16.msra.mxu0 %v1561_v40 }
 0x22a   :  { %v1588_v10 = vpack.c.bf16 %v1552_v28, %v1544_v16  ;;  %1660 = vmatpush.bf16.msra.mxu1 %v1562_v11 }
 0x22b   :  { %1676 = vmatpush.bf16.msra.mxu2 %v1587_v48 }
 0x22c   :  { %1695 = vmatpush.bf16.msra.mxu3 %v1588_v10  ;;  %2128 = vmatmul.msk.bf16.vlgmr.msra.gmra.mxu0 %vm1627_vm1, %v3526_v47 }
 0x22d   :  { %2130 = vmatmul.msk.bf16.vlgmr.msra.gmra.mxu1 %vm1627_vm1, %v3526_v47 }
 0x22f   :  { %1677 = vmatpush.bf16.msra.mxu2 %v1579_v61 }
 0x230   :  { %1696 = vmatpush.bf16.msra.mxu3 %v1580_v31 }
 0x233   :  { %1678 = vmatpush.bf16.msra.mxu2 %v1571_v7 }
 0x234   :  { %1697 = vmatpush.bf16.msra.mxu3 %v1572_v39 }
 0x237   :  { %1679 = vmatpush.bf16.msra.mxu2 %v1563_v8 }
 0x238   :  { %1698 = vmatpush.bf16.msra.mxu3 %v1564_v45 }
 0x23a   :  { %2132 = vmatmul.msk.bf16.vlgmr.msra.gmra.mxu2 %vm1627_vm1, %v3526_v47 }
 0x23b   :  { %2134 = vmatmul.msk.bf16.vlgmr.msra.gmra.mxu3 %vm1627_vm1, %v3526_v47 }
 0x23c   :  { %2129 = vmatmul.msk.bf16.gmra.mxu0 %vm1627_vm1, %v3549_v14 }
 0x23d   :  { %2131 = vmatmul.msk.bf16.gmra.mxu1 %vm1627_vm1, %v3549_v14 }
 0x24a   :  { %2133 = vmatmul.msk.bf16.gmra.mxu2 %vm1627_vm1, %v3549_v14 }
 0x24b   :  { %2135 = vmatmul.msk.bf16.gmra.mxu3 %vm1627_vm1, %v3549_v14 }
 0x25e   :  { %v1386_v20 = vpop.f32.mrf.mxu0 }
 0x25f   :  { %v1415_v53 = vpop.f32.mrf.mxu1 }
 0x266   :  { %v1388_v29 = vpop.f32.mrf.mxu0 }
 0x267   :  { %v1417_v5 = vpop.f32.mrf.mxu1  ;;  %v1389_v8 = vadd.f32 %v1388_v29, %v3497_v50 }
 0x26c   :  { %v3563_v41 = vpop.f32.mrf.mxu2 }
 0x26d   :  { %v3565_v30 = vpop.f32.mrf.mxu3 }
 0x26e   :  { %v1391_v51 = vpop.f32.mrf.mxu0 }
 0x26f   :  { %v1420_v57 = vpop.f32.mrf.mxu1  ;;  %v1392_v33 = vadd.f32 %v1391_v51, %v3478_v44  ;;  %v1416_v51 = vadd.f32 %v1415_v53, %v3503_v2 }
 0x270   :  { %v1421_v17 = vadd.f32 %v1420_v57, %v3478_v44  ;;  %v1505_v57 = vmax.f32 %v1389_v8, 0.0 }
 0x274   :  { %v3567_v27 = vpop.f32.mrf.mxu2 }
 0x275   :  { %v3569_v1 = vpop.f32.mrf.mxu3 }
 0x276   :  { %v1393_v38 = vpop.f32.mrf.mxu0 }
 0x277   :  { %v1422_v37 = vpop.f32.mrf.mxu1  ;;  %v1394_v34 = vadd.f32 %v1393_v38, %v3491_v52 }
 0x278   :  { %v1423_v49 = vadd.f32 %v1422_v37, %v3491_v52  ;;  %v1387_v37 = vadd.f32 %v1386_v20, %v3503_v2 }
 0x279   :  { %v1521_v45 = vmax.f32 %v1394_v34, 0.0 }
 0x27c   :  { %v3571_v19 = vpop.f32.mrf.mxu2 }
 0x27d   :  { %v3573_v55 = vpop.f32.mrf.mxu3 }
 0x27e   :  { %v1396_v15 = vpop.f32.mrf.mxu0 }
 0x27f   :  { %v1425_v59 = vpop.f32.mrf.mxu1  ;;  %v1397_v9 = vadd.f32 %v1396_v15, %v3474_v58  ;;  %v1418_v15 = vadd.f32 %v1417_v5, %v3497_v50 }
 0x280   :  { %v1426_v22 = vadd.f32 %v1425_v59, %v3474_v58  ;;  %v1522_v59 = vmax.f32 %v1423_v49, 0.0 }
 0x281   :  { %v1529_v39 = vmax.f32 %v1397_v9, 0.0 }
 0x282   :  { %v1530_v62 = vmax.f32 %v1426_v22, 0.0 }
 0x284   :  { %v3575_v4 = vpop.f32.mrf.mxu2 }
 0x285   :  { %v3577_v3 = vpop.f32.mrf.mxu3  ;;  %v1452_v34 = vadd.f32 %v3575_v4, %v3491_v52  ;;  %v1447_v4 = vadd.f32 %v3567_v27, %v3497_v50  ;;  %v1474_v27 = vadd.f32 %v3565_v30, %v3503_v2 }
 0x286   :  { %v1398_v13 = vpop.f32.mrf.mxu0 }
 0x287   :  { %v1427_v46 = vpop.f32.mrf.mxu1  ;;  %v1399_v24 = vadd.f32 %v1398_v13, %v3481_v42  ;;  %v1523_v49 = vmax.f32 %v1452_v34, 0.0 }
 0x288   :  { %v1428_v35 = vadd.f32 %v1427_v46, %v3481_v42  ;;  %v1513_v46 = vmax.f32 %v1392_v33, 0.0 }
 0x289   :  { %v1537_v31 = vmax.f32 %v1399_v24, 0.0 }
 0x28a   :  { %v1538_v0 = vmax.f32 %v1428_v35, 0.0 }
 0x28b   :  { %v1581_v38 = vpack.c.bf16 %v1537_v31, %v1529_v39 }
 0x28c   :  { %v1454_v56 = vpop.f32.mrf.mxu2  ;;  %v1582_v13 = vpack.c.bf16 %v1538_v0, %v1530_v62 }
 0x28d   :  { %v3579_v40 = vpop.f32.mrf.mxu3  ;;  %v1455_v9 = vadd.f32 %v1454_v56, %v3474_v58 }
 0x28e   :  { %v1401_v36 = vpop.f32.mrf.mxu0  ;;  %v1484_v22 = vadd.f32 %v3579_v40, %v3474_v58  ;;  %v1479_v58 = vadd.f32 %v3573_v55, %v3478_v44 }
 0x28f   :  { %v1430_v16 = vpop.f32.mrf.mxu1  ;;  %v1402_v60 = vadd.f32 %v1401_v36, %v3470_v12  ;;  %v1514_v36 = vmax.f32 %v1421_v17, 0.0 }
 0x290   :  { %v1431_v18 = vadd.f32 %v1430_v16, %v3470_v12  ;;  %v1532_v40 = vmax.f32 %v1484_v22, 0.0 }
 0x291   :  { %v1545_v32 = vmax.f32 %v1402_v60, 0.0  ;;  %v1573_v60 = vpack.c.bf16 %v1521_v45, %v1513_v46  ;;  %v1574_v24 = vpack.c.bf16 %v1522_v59, %v1514_v36  ;;  %v3640_v36 = vpop.permute.xlu0 %1599 }
 0x292   :  { %v1546_v61 = vmax.f32 %v1431_v18, 0.0 }
 0x294   :  { %v1456_v28 = vpop.f32.mrf.mxu2 }
 0x295   :  { %v1485_v11 = vpop.f32.mrf.mxu3  ;;  %v1457_v5 = vadd.f32 %v1456_v28, %v3481_v42 }
 0x296   :  { %v1403_v48 = vpop.f32.mrf.mxu0  ;;  %v1486_v35 = vadd.f32 %v1485_v11, %v3481_v42 }
 0x297   :  { %v1404_v23 = vadd.f32 %v1403_v48, %v3466_v6  ;;  %v1432_v10 = vpop.f32.mrf.mxu1  ;;  %v1506_v48 = vmax.f32 %v1418_v15, 0.0  ;;  %v1539_v42 = vmax.f32 %v1457_v5, 0.0 }
 0x298   :  { %v1433_v26 = vadd.f32 %v1432_v10, %v3466_v6  ;;  %v1497_v10 = vmax.f32 %v1387_v37, 0.0  ;;  %v1540_v31 = vmax.f32 %v1486_v35, 0.0 }
 0x299   :  { %v1553_v63 = vmax.f32 %v1404_v23, 0.0 }
 0x29a   :  { %v1554_v43 = vmax.f32 %v1433_v26, 0.0  ;;  %v1498_v26 = vmax.f32 %v1416_v51, 0.0 }
 0x29b   :  { %v1589_v21 = vpack.c.bf16 %v1553_v63, %v1545_v32 }
 0x29c   :  { %v1459_v25 = vpop.f32.mrf.mxu2  ;;  %v1590_v54 = vpack.c.bf16 %v1554_v43, %v1546_v61  ;;  %v1566_v43 = vpack.c.bf16 %v1506_v48, %v1498_v26 }
 0x29d   :  { %v1488_v7 = vpop.f32.mrf.mxu3  ;;  %1714 = vmatpush.bf16.msrb.mxu0 %v1589_v21  ;;  %v1460_v16 = vadd.f32 %v1459_v25, %v3470_v12  ;;  %v1450_v21 = vadd.f32 %v3571_v19, %v3478_v44  ;;  %v1531_v25 = vmax.f32 %v1455_v9, 0.0  ;;  %v1445_v44 = vadd.f32 %v3563_v41, %v3503_v2 }
 0x29e   :  { %1733 = vmatpush.bf16.msrb.mxu1 %v1590_v54  ;;  %v1489_v29 = vadd.f32 %v1488_v7, %v3470_v12  ;;  %v1565_v12 = vpack.c.bf16 %v1505_v57, %v1497_v10  ;;  %v1516_v54 = vmax.f32 %v1479_v58, 0.0  ;;  %v1507_v7 = vmax.f32 %v1447_v4, 0.0 }
 0x29f   :  { %v1547_v32 = vmax.f32 %v1460_v16, 0.0  ;;  %v1583_v0 = vpack.c.bf16 %v1539_v42, %v1531_v25  ;;  %v1515_v55 = vmax.f32 %v1450_v21, 0.0  ;;  %v3642_v16 = vpop.permute.xlu2 %1609 }
 0x2a0   :  { %v1548_v28 = vmax.f32 %v1489_v29, 0.0  ;;  %v3644_v29 = vpop.permute.xlu1 %1604 }
 0x2a1   :  { %1715 = vmatpush.bf16.msrb.mxu0 %v1581_v38  ;;  %v1575_v33 = vpack.c.bf16 %v1523_v49, %v1515_v55 }
 0x2a2   :  { %1734 = vmatpush.bf16.msrb.mxu1 %v1582_v13 }
 0x2a4   :  { %v1461_v18 = vpop.f32.mrf.mxu2 }
 0x2a5   :  { %v1462_v23 = vadd.f32 %v1461_v18, %v3466_v6  ;;  %v1490_v20 = vpop.f32.mrf.mxu3  ;;  %1716 = vmatpush.bf16.msrb.mxu0 %v1573_v60 }
 0x2a6   :  { %v1491_v53 = vadd.f32 %v1490_v20, %v3466_v6  ;;  %1735 = vmatpush.bf16.msrb.mxu1 %v1574_v24  ;;  %v1481_v6 = vadd.f32 %v3577_v3, %v3491_v52  ;;  %v1476_v52 = vadd.f32 %v3569_v1, %v3497_v50  ;;  %v1584_v3 = vpack.c.bf16 %v1540_v31, %v1532_v40 }
 0x2a7   :  { %v1555_v63 = vmax.f32 %v1462_v23, 0.0  ;;  %v1499_v50 = vmax.f32 %v1445_v44, 0.0  ;;  %v1500_v1 = vmax.f32 %v1474_v27, 0.0  ;;  %v3648_v23 = vpop.permute.xlu0 %1614 }
 0x2a8   :  { %v1556_v61 = vmax.f32 %v1491_v53, 0.0  ;;  %v1524_v19 = vmax.f32 %v1481_v6, 0.0  ;;  %v1508_v39 = vmax.f32 %v1476_v52, 0.0  ;;  %v3650_v53 = vpop.permute.xlu2 %1829  ;;  %v3660_v22 = vpop.permute.xlu1 %1824 }
 0x2a9   :  { %v1591_v11 = vpack.c.bf16 %v1555_v63, %v1547_v32  ;;  %1717 = vmatpush.bf16.msrb.mxu0 %v1565_v12  ;;  %v1567_v62 = vpack.c.bf16 %v1507_v7, %v1499_v50  ;;  %v1643_v2 = vpop.f32.mrf.mxu0 }
 0x2aa   :  { %v1592_v56 = vpack.c.bf16 %v1556_v61, %v1548_v28  ;;  %1736 = vmatpush.bf16.msrb.mxu1 %v1566_v43  ;;  %v1576_v17 = vpack.c.bf16 %v1524_v19, %v1516_v54  ;;  %v1568_v8 = vpack.c.bf16 %v1508_v39, %v1500_v1  ;;  %v1662_v41 = vpop.f32.mrf.mxu1  ;;  %v3653_v26 = vadd.f32 %v1643_v2, %v3640_v36 }
 0x2ab   :  { %1752 = vmatpush.bf16.msrb.mxu2 %v1591_v11  ;;  %v1663_v24 = vadd.f32 %v1662_v41, %v3640_v36 }
 0x2ac   :  { %1771 = vmatpush.bf16.msrb.mxu3 %v1592_v56  ;;  %2136 = vmatmul.msk.bf16.vlgmr.msrb.gmra.mxu0 %vm1627_vm1, %v3526_v47  ;;  %v1786_v11 = vmax.f32 %v3653_v26, 0.0 }
 0x2ad   :  { %2138 = vmatmul.msk.bf16.vlgmr.msrb.gmra.mxu1 %vm1627_vm1, %v3526_v47  ;;  %v1787_v10 = vmax.f32 %v1663_v24, 0.0 }
 0x2af   :  { %1753 = vmatpush.bf16.msrb.mxu2 %v1583_v0  ;;  %v1843_v34 = vmul.f32 %v3660_v22, %v1787_v10  ;;  %v3677_v27 = vpop.permute.xlu0 %1834 }
 0x2b0   :  { %1772 = vmatpush.bf16.msrb.mxu3 %v1584_v3 }
 0x2b1   :  { %v1645_v30 = vpop.f32.mrf.mxu0 }
 0x2b2   :  { %v1664_v45 = vpop.f32.mrf.mxu1  ;;  %v3656_v9 = vadd.f32 %v1645_v30, %v3644_v29 }
 0x2b3   :  { %1754 = vmatpush.bf16.msrb.mxu2 %v1575_v33  ;;  %v1665_v48 = vadd.f32 %v1664_v45, %v3644_v29 }
 0x2b4   :  { %1773 = vmatpush.bf16.msrb.mxu3 %v1576_v17  ;;  %v1794_v31 = vmax.f32 %v3656_v9, 0.0 }
 0x2b5   :  { %v1795_v5 = vmax.f32 %v1665_v48, 0.0 }
 0x2b7   :  { %1755 = vmatpush.bf16.msrb.mxu2 %v1567_v62  ;;  %v1851_v32 = vmul.f32 %v3650_v53, %v1795_v5 }
 0x2b8   :  { %1774 = vmatpush.bf16.msrb.mxu3 %v1568_v8 }
 0x2b9   :  { %v1648_v15 = vpop.f32.mrf.mxu0  ;;  %v1883_v56 = vadd.f32 %v1851_v32, %v1843_v34 }
 0x2ba   :  { %2140 = vmatmul.msk.bf16.vlgmr.msrb.gmra.mxu2 %vm1627_vm1, %v3526_v47  ;;  %v3670_v21 = vadd.f32 %v1648_v15, %v3642_v16 }
 0x2bb   :  { %2142 = vmatmul.msk.bf16.vlgmr.msrb.gmra.mxu3 %vm1627_vm1, %v3526_v47  ;;  %v1667_v47 = vpop.f32.mrf.mxu1 }
 0x2bc   :  { %2137 = vmatmul.msk.bf16.gmra.mxu0 %vm1627_vm1, %v3549_v14  ;;  %v1668_v63 = vadd.f32 %v1667_v47, %v3642_v16 }
 0x2bd   :  { %2139 = vmatmul.msk.bf16.gmra.mxu1 %vm1627_vm1, %v3549_v14  ;;  %v1681_v38 = vpop.f32.mrf.mxu2 }
 0x2be   :  { %v1700_v59 = vpop.f32.mrf.mxu3  ;;  %v1682_v42 = vadd.f32 %v1681_v38, %v3640_v36  ;;  %v1803_v25 = vmax.f32 %v1668_v63, 0.0 }
 0x2bf   :  { %v1701_v6 = vadd.f32 %v1700_v59, %v3640_v36 }
 0x2c0   :  { %v1788_v52 = vmax.f32 %v1682_v42, 0.0  ;;  %v1859_v17 = vmul.f32 %v3677_v27, %v1803_v25 }
 0x2c1   :  { %v3638_v37 = vpop.f32.mrf.mxu0  ;;  %v1789_v54 = vmax.f32 %v1701_v6, 0.0 }
 0x2c2   :  { %v1844_v15 = vmul.f32 %v3660_v22, %v1788_v52  ;;  %v1802_v52 = vmax.f32 %v3670_v21, 0.0 }
 0x2c3   :  { %v1669_v51 = vpop.f32.mrf.mxu1 }
 0x2c4   :  { %v1670_v58 = vadd.f32 %v1669_v51, %v3648_v23 }
 0x2c5   :  { %v1683_v13 = vpop.f32.mrf.mxu2 }
 0x2c6   :  { %v1702_v46 = vpop.f32.mrf.mxu3  ;;  %v1684_v28 = vadd.f32 %v1683_v13, %v3644_v29  ;;  %v1811_v2 = vmax.f32 %v1670_v58, 0.0 }
 0x2c7   :  { %v1703_v61 = vadd.f32 %v1702_v46, %v3644_v29  ;;  %v1845_v46 = vmul.f32 %v3660_v22, %v1789_v54 }
 0x2c8   :  { %v1796_v40 = vmax.f32 %v1684_v28, 0.0 }
 0x2c9   :  { %v1797_v4 = vmax.f32 %v1703_v61, 0.0 }
 0x2ca   :  { %2141 = vmatmul.msk.bf16.gmra.mxu2 %vm1627_vm1, %v3549_v14  ;;  %v1852_v41 = vmul.f32 %v3650_v53, %v1796_v40 }
 0x2cb   :  { %2143 = vmatmul.msk.bf16.gmra.mxu3 %vm1627_vm1, %v3549_v14  ;;  %v1853_v30 = vmul.f32 %v3650_v53, %v1797_v4 }
 0x2cc   :  { %v1892_v10 = vadd.f32 %v1852_v41, %v1844_v15 }
 0x2cd   :  { %v1686_v60 = vpop.f32.mrf.mxu2 }
 0x2ce   :  { %v1705_v18 = vpop.f32.mrf.mxu3  ;;  %v1687_v49 = vadd.f32 %v1686_v60, %v3642_v16 }
 0x2cf   :  { %v1706_v19 = vadd.f32 %v1705_v18, %v3642_v16  ;;  %v1651_v18 = vadd.f32 %v3638_v37, %v3648_v23 }
 0x2d0   :  { %v1804_v45 = vmax.f32 %v1687_v49, 0.0 }
 0x2d1   :  { %v1805_v59 = vmax.f32 %v1706_v19, 0.0  ;;  %v1884_v19 = vadd.f32 %v1883_v56, %v1859_v17  ;;  %v1842_v17 = vmul.f32 %v3660_v22, %v1786_v11 }
 0x2d2   :  { %v1860_v32 = vmul.f32 %v3677_v27, %v1804_v45  ;;  %v1858_v45 = vmul.f32 %v3677_v27, %v1802_v52 }
 0x2d5   :  { %v1688_v12 = vpop.f32.mrf.mxu2 }
 0x2d6   :  { %v1707_v43 = vpop.f32.mrf.mxu3  ;;  %v1689_v7 = vadd.f32 %v1688_v12, %v3648_v23  ;;  %v1861_v12 = vmul.f32 %v3677_v27, %v1805_v59 }
 0x2d7   :  { %v1708_v33 = vadd.f32 %v1707_v43, %v3648_v23 }
 0x2d8   :  { %v1812_v51 = vmax.f32 %v1689_v7, 0.0 }
 0x329   :  { %v1719_v57 = vpop.f32.mrf.mxu0 }
 0x32a   :  { %v1738_v14 = vpop.f32.mrf.mxu1  ;;  %v1720_v39 = vadd.f32 %v1719_v57, %v3640_v36  ;;  %v1813_v57 = vmax.f32 %v1708_v33, 0.0 }
 0x32b   :  { %v1739_v50 = vadd.f32 %v1738_v14, %v3640_v36  ;;  %v3694_v14 = vpop.permute.xlu1 %1839 }
 0x32c   :  { %v1790_v60 = vmax.f32 %v1720_v39, 0.0  ;;  %v1868_v37 = vmul.f32 %v3694_v14, %v1812_v51  ;;  %v1869_v42 = vmul.f32 %v3694_v14, %v1813_v57 }
 0x32d   :  { %v1791_v48 = vmax.f32 %v1739_v50, 0.0  ;;  %v1850_v50 = vmul.f32 %v3650_v53, %v1794_v31 }
 0x32e   :  { %v1846_v6 = vmul.f32 %v3660_v22, %v1790_v60 }
 0x32f   :  { %v1847_v58 = vmul.f32 %v3660_v22, %v1791_v48 }
 0x331   :  { %v1721_v20 = vpop.f32.mrf.mxu0 }
 0x332   :  { %v1740_v35 = vpop.f32.mrf.mxu1  ;;  %v1722_v3 = vadd.f32 %v1721_v20, %v3644_v29  ;;  %v1867_v20 = vmul.f32 %v3694_v14, %v1811_v2 }
 0x333   :  { %v1741_v44 = vadd.f32 %v1740_v35, %v3644_v29  ;;  %v1901_v35 = vadd.f32 %v1853_v30, %v1845_v46 }
 0x334   :  { %v1798_v47 = vmax.f32 %v1722_v3, 0.0  ;;  %v1893_v3 = vadd.f32 %v1892_v10, %v1860_v32 }
 0x335   :  { %v1799_v13 = vmax.f32 %v1741_v44, 0.0  ;;  %v1902_v54 = vadd.f32 %v1901_v35, %v1861_v12 }
 0x336   :  { %v1854_v28 = vmul.f32 %v3650_v53, %v1798_v47  ;;  %v1894_v41 = vadd.f32 %v1893_v3, %v1868_v37  ;;  %v1874_v47 = vadd.f32 %v1850_v50, %v1842_v17 }
 0x337   :  { %v1855_v61 = vmul.f32 %v3650_v53, %v1799_v13  ;;  %v1903_v30 = vadd.f32 %v1902_v54, %v1869_v42 }
 0x338   :  { %v1910_v7 = vadd.f32 %v1854_v28, %v1846_v6  ;;  %v1895_v46 = vrot.slane %v1894_v41, 4 }
 0x339   :  { %v1724_v0 = vpop.f32.mrf.mxu0  ;;  %v1919_v33 = vadd.f32 %v1855_v61, %v1847_v58  ;;  %v1904_v51 = vrot.slane %v1903_v30, 4 }
 0x33a   :  { %v1743_v55 = vpop.f32.mrf.mxu1  ;;  %v1725_v1 = vadd.f32 %v1724_v0, %v3642_v16  ;;  %v1896_v12 = vadd.f32 %v1895_v46, %v1894_v41 }
 0x33b   :  { %v1744_v62 = vadd.f32 %v1743_v55, %v3642_v16 }
 0x33c   :  { %v1806_v24 = vmax.f32 %v1725_v1, 0.0  ;;  %v1810_v1 = vmax.f32 %v1651_v18, 0.0  ;;  %v1875_v18 = vadd.f32 %v1874_v47, %v1858_v45 }
 0x33d   :  { %v3686_v8 = vpop.f32.mrf.mxu2  ;;  %v1807_v5 = vmax.f32 %v1744_v62, 0.0  ;;  %v1885_v62 = vadd.f32 %v1884_v19, %v1867_v20 }
 0x33e   :  { %v3690_v38 = vpop.f32.mrf.mxu3  ;;  %v1862_v40 = vmul.f32 %v3677_v27, %v1806_v24  ;;  %v1866_v9 = vmul.f32 %v3694_v14, %v1810_v1  ;;  %v1758_v26 = vadd.f32 %v3686_v8, %v3640_v36 }
 0x33f   :  { %v1863_v4 = vmul.f32 %v3677_v27, %v1807_v5  ;;  %v1886_v13 = vrot.slane %v1885_v62, 4  ;;  %v1777_v11 = vadd.f32 %v3690_v38, %v3640_v36 }
 0x340   :  { %v1911_v21 = vadd.f32 %v1910_v7, %v1862_v40  ;;  %v1876_v35 = vadd.f32 %v1875_v18, %v1866_v9  ;;  %v1792_v61 = vmax.f32 %v1758_v26, 0.0  ;;  %v1950_v9 = vpop.permute.xlu2 %1949 }
 0x341   :  { %v1726_v63 = vpop.f32.mrf.mxu0  ;;  %v1920_v56 = vadd.f32 %v1919_v33, %v1863_v4 }
 0x342   :  { %v1727_v43 = vadd.f32 %v1726_v63, %v3648_v23  ;;  %v1745_v34 = vpop.f32.mrf.mxu1  ;;  %v1887_v63 = vadd.f32 %v1886_v13, %v1885_v62  ;;  %v1877_v36 = vrot.slane %v1876_v35, 4  ;;  %v1848_v4 = vmul.f32 %v3660_v22, %v1792_v61 }
 0x343   :  { %v1746_v25 = vadd.f32 %v1745_v34, %v3648_v23 }
 0x344   :  { %v1814_v49 = vmax.f32 %v1727_v43, 0.0  ;;  %v1793_v43 = vmax.f32 %v1777_v11, 0.0  ;;  %v1888_v6 = vrot.slane %v1887_v63, 2  ;;  %v1878_v7 = vadd.f32 %v1877_v36, %v1876_v35 }
 0x345   :  { %v1759_v0 = vpop.f32.mrf.mxu2  ;;  %v1815_v44 = vmax.f32 %v1746_v25, 0.0  ;;  %v1897_v25 = vrot.slane %v1896_v12, 2 }
 0x346   :  { %v1778_v55 = vpop.f32.mrf.mxu3  ;;  %v1870_v39 = vmul.f32 %v3694_v14, %v1814_v49  ;;  %v1760_v31 = vadd.f32 %v1759_v0, %v3644_v29  ;;  %v1849_v49 = vmul.f32 %v3660_v22, %v1793_v43 }
 0x347   :  { %v1871_v2 = vmul.f32 %v3694_v14, %v1815_v44  ;;  %v1779_v57 = vadd.f32 %v1778_v55, %v3644_v29  ;;  %v1905_v29 = vadd.f32 %v1904_v51, %v1903_v30 }
 0x348   :  { %v1912_v15 = vadd.f32 %v1911_v21, %v1870_v39  ;;  %v1800_v32 = vmax.f32 %v1760_v31, 0.0 }
 0x349   :  { %v1921_v59 = vadd.f32 %v1920_v56, %v1871_v2  ;;  %v1801_v28 = vmax.f32 %v1779_v57, 0.0  ;;  %v1906_v58 = vrot.slane %v1905_v29, 2  ;;  %v1889_v2 = vadd.f32 %v1888_v6, %v1887_v63 }
 0x34a   :  { %v1913_v5 = vrot.slane %v1912_v15, 4  ;;  %v1856_v38 = vmul.f32 %v3650_v53, %v1800_v32 }
 0x34b   :  { %v1922_v20 = vrot.slane %v1921_v59, 4  ;;  %v1907_v50 = vadd.f32 %v1906_v58, %v1905_v29  ;;  %v1890_v31 = vrot.slane %v1889_v2, 1 }
 0x34c   :  { %v1914_v8 = vadd.f32 %v1913_v5, %v1912_v15  ;;  %v1928_v33 = vadd.f32 %v1856_v38, %v1848_v4 }
 0x34d   :  { %v1762_v60 = vpop.f32.mrf.mxu2  ;;  %v1923_v37 = vadd.f32 %v1922_v20, %v1921_v59  ;;  %v1891_v5 = vadd.f32 %v1890_v31, %v1889_v2 }
 0x34e   :  { %v1763_v48 = vadd.f32 %v1762_v60, %v3642_v16  ;;  %v1781_v24 = vpop.f32.mrf.mxu3  ;;  %v1915_v3 = vrot.slane %v1914_v8, 2 }
 0x34f   :  { %v1782_v10 = vadd.f32 %v1781_v24, %v3642_v16  ;;  %v1857_v16 = vmul.f32 %v3650_v53, %v1801_v28  ;;  %v1924_v44 = vrot.slane %v1923_v37, 2  ;;  %v1898_v53 = vadd.f32 %v1897_v25, %v1896_v12 }
 0x350   :  { %v1808_v34 = vmax.f32 %v1763_v48, 0.0  ;;  %v1916_v30 = vadd.f32 %v1915_v3, %v1914_v8  ;;  %v1952_v48 = vperm.slane %v1950_v9, 0 }
 0x351   :  { %v1809_v42 = vmax.f32 %v1782_v10, 0.0  ;;  %v1937_v1 = vadd.f32 %v1857_v16, %v1849_v49  ;;  %v1925_v21 = vadd.f32 %v1924_v44, %v1923_v37  ;;  %v1899_v15 = vrot.slane %v1898_v53, 1 }
 0x352   :  { %v1864_v0 = vmul.f32 %v3677_v27, %v1808_v34  ;;  %v1917_v13 = vrot.slane %v1916_v30, 1  ;;  %v1954_v61 = vadd.f32 %v1952_v48, %v1891_v5 }
 0x353   :  { %v1865_v55 = vmul.f32 %v3677_v27, %v1809_v42  ;;  %v1879_v27 = vrot.slane %v1878_v7, 2  ;;  %v1926_v46 = vrot.slane %v1925_v21, 1  ;;  %v1900_v18 = vadd.f32 %v1899_v15, %v1898_v53 }
 0x354   :  { %v1929_v22 = vadd.f32 %v1928_v33, %v1864_v0  ;;  %v1969_v16 = vrot.slane %v1954_v61, 7 }
 0x355   :  { %v1764_v40 = vpop.f32.mrf.mxu2  ;;  %v1938_v56 = vadd.f32 %v1937_v1, %v1865_v55  ;;  %v1880_v60 = vadd.f32 %v1879_v27, %v1878_v7  ;;  %v1927_v20 = vadd.f32 %v1926_v46, %v1925_v21  ;;  %v1955_v63 = vadd.f32 %v1952_v48, %v1900_v18 }
 0x356   :  { %v1765_v52 = vadd.f32 %v1764_v40, %v3648_v23  ;;  %v1783_v19 = vpop.f32.mrf.mxu3 }
 0x357   :  { %v1784_v54 = vadd.f32 %v1783_v19, %v3648_v23  ;;  %v1908_v23 = vrot.slane %v1907_v50, 1  ;;  %v1881_v32 = vrot.slane %v1880_v60, 1  ;;  %v1958_v34 = vadd.f32 %v1952_v48, %v1927_v20 }
 0x358   :  { %v1816_v39 = vmax.f32 %v1765_v52, 0.0  ;;  %v1970_v38 = vrot.slane %v1955_v63, 6 }
 0x359   :  { %v1817_v62 = vmax.f32 %v1784_v54, 0.0  ;;  %v1909_v26 = vadd.f32 %v1908_v23, %v1907_v50  ;;  %v1882_v42 = vadd.f32 %v1881_v32, %v1880_v60  ;;  %v1973_v4 = vrot.slane %v1958_v34, 3 }
 0x35a   :  { %v1872_v41 = vmul.f32 %v3694_v14, %v1816_v39 }
 0x35b   :  { %v1873_v17 = vmul.f32 %v3694_v14, %v1817_v62  ;;  %v1918_v14 = vadd.f32 %v1917_v13, %v1916_v30  ;;  %v1956_v12 = vadd.f32 %v1952_v48, %v1909_v26  ;;  %v1953_v0 = vadd.f32 %v1952_v48, %v1882_v42 }
 0x35c   :  { %v1930_v45 = vadd.f32 %v1929_v22, %v1872_v41 }
 0x35d   :  { %v1939_v59 = vadd.f32 %v1938_v56, %v1873_v17  ;;  %v1957_v43 = vadd.f32 %v1952_v48, %v1918_v14  ;;  %v1971_v6 = vrot.slane %v1956_v12, 5  ;;  %v1977_v3 = vsel %vm1976_vm2, %v1953_v0, %v1969_v16 }
 0x35e   :  { %v1931_v47 = vrot.slane %v1930_v45, 4 }
 0x35f   :  { %v1940_v51 = vrot.slane %v1939_v59, 4  ;;  %v1972_v40 = vrot.slane %v1957_v43, 4  ;;  %v1979_v19 = vsel %vm1978_vm3, %v1970_v38, %v1971_v6 }
 0x360   :  { %v1932_v57 = vadd.f32 %v1931_v47, %v1930_v45  ;;  %v1981_v54 = vsel %vm1980_vm4, %v1977_v3, %v1979_v19 }
 0x361   :  { %v1941_v11 = vadd.f32 %v1940_v51, %v1939_v59  ;;  %v1983_v44 = vsel %vm1982_vm5, %v1972_v40, %v1973_v4 }
 0x362   :  { %v1933_v24 = vrot.slane %v1932_v57, 2 }
 0x363   :  { %v1942_v10 = vrot.slane %v1941_v11, 2 }
 0x364   :  { %v1934_v35 = vadd.f32 %v1933_v24, %v1932_v57 }
 0x365   :  { %v1943_v29 = vadd.f32 %v1942_v10, %v1941_v11 }
 0x366   :  { %v1935_v28 = vrot.slane %v1934_v35, 1 }
 0x367   :  { %v1944_v8 = vrot.slane %v1943_v29, 1 }
 0x368   :  { %v1936_v37 = vadd.f32 %v1935_v28, %v1934_v35 }
 0x369   :  { %v1945_v36 = vadd.f32 %v1944_v8, %v1943_v29 }
 0x36a   :  { %v1959_v25 = vadd.f32 %v1952_v48, %v1936_v37 }
 0x36b   :  { %v1960_v58 = vadd.f32 %v1952_v48, %v1945_v36 }
 0x36c   :  { %v1974_v49 = vrot.slane %v1959_v25, 2 }
 0x36d   :  { %v1975_v52 = vrot.slane %v1960_v58, 1 }
 0x36f   :  { %v1985_v55 = vsel %vm1984_vm6, %v1974_v49, %v1975_v52 }
 0x370   :  { %v1987_v7 = vsel %vm1986_vm7, %v1983_v44, %v1985_v55 }
 0x371   :  { %v1989_v33 = vsel %vm1988_vm8, %v1981_v54, %v1987_v7 }
 0x372   :  { %1991 = vst [vmem:[#allocation3] sm:$0xff] %v1989_v33 }
 0x373   :  { %2002 = dma.vmem_to_hbm [thread:$0]  %s1998_s14, 128, %s2000_s17, [#allocation4]  }
 0x374   :  { %2187 = dma.done.wait [#allocation4], 128  }
 0x375   :  { %2188 = vsyncadd [#allocation4], 4294967168 }
 0x376   :  { %2007 = vsyncpa [#allocation4], 1 }

</bundles_post_ra>
